<compile_context>
chip_gen: v6e
topology: v6e:2x2x1
jax: 0.10.0
libtpu: 0.0.40
codegen_flags: <defaults>
</compile_context>

<pallas_src>
import functools

import jax
import jax.numpy as jnp
from jax.experimental import pallas as pl
from jax.experimental.pallas import tpu as pltpu


_MAX_TILE = 1024  # max rows per grid step (review: 512-1024 beats 256)


def _round_up(x, m):
    return (x + m - 1) // m * m


@functools.lru_cache(maxsize=None)
def _vmem_limit_bytes():
    """~70% of physical VMEM, capped at 100 MiB.

    -> ~45 MiB on v7x (64 MiB physical), ~90 MiB on v5e/v6e (128 MiB).
    """
    cap = 64 << 20  # conservative fallback (v7x-sized)
    try:
        cap = int(pltpu.get_tpu_info().vmem_capacity_bytes)
    except Exception:
        pass
    return int(min(100 << 20, cap * 7 // 10))


def _pick_tile(m, max_tile=_MAX_TILE):
    """Row tile: multiple of 8, <= max_tile, and (whenever m >= 16) chosen so
    the grid has >= 2 steps so both v7x TensorCores get sharded work."""
    if m <= 16:
        return m  # single full block (full-dim blocks are always legal)
    tm = min(max_tile, _round_up(pl.cdiv(m, 2), 8))
    return min(tm, m)


# ---------------------------------------------------------------------------
# Pallas kernels
# ---------------------------------------------------------------------------

def _mm_lrelu_kernel(x_ref, w_ref, o_ref):
    # bf16 x bf16 on the MXU, f32 accumulation, LeakyReLU(0.2) as mul+max.
    acc = jnp.dot(x_ref[...], w_ref[...], preferred_element_type=jnp.float32)
    o_ref[...] = jnp.maximum(acc, 0.2 * acc).astype(o_ref.dtype)


def _conv4_fc_kernel(x_ref, w4_ref, fcw_ref, fcb_ref, o_ref):
    # Fused conv4 (as matmul) + LeakyReLU + Linear; the 1024-wide hidden
    # activation never leaves VMEM.
    h = jnp.dot(x_ref[...], w4_ref[...], preferred_element_type=jnp.float32)
    h = jnp.maximum(h, 0.2 * h).astype(jnp.bfloat16)
    y = jnp.dot(h, fcw_ref[...], preferred_element_type=jnp.float32)
    o_ref[...] = y + fcb_ref[...]


def matmul_lrelu(x, w):
    """x: (M, K) bf16, w: (K, N) bf16 -> LeakyReLU(x @ w): (M, N) bf16."""
    M, K = x.shape
    K2, N = w.shape
    assert K == K2
    tm = _pick_tile(M)
    grid = (pl.cdiv(M, tm),)
    return pl.pallas_call(
        _mm_lrelu_kernel,
        out_shape=jax.ShapeDtypeStruct((M, N), jnp.bfloat16),
        grid=grid,
        in_specs=[
            pl.BlockSpec((tm, K), lambda i: (i, 0)),
            pl.BlockSpec((K, N), lambda i: (0, 0)),   # weight resident
        ],
        out_specs=pl.BlockSpec((tm, N), lambda i: (i, 0)),
        compiler_params=pltpu.CompilerParams(
            dimension_semantics=("parallel",),
            vmem_limit_bytes=_vmem_limit_bytes()),
    )(x, w)


def conv4_fc(x, w4, fcw, fcb):
    """x: (B, 16*4nh) bf16 conv4 patches; w4: (16*4nh, 1024) bf16;
    fcw: (1024, E) bf16; fcb: (1, E) f32 -> (B, E) f32."""
    B, K = x.shape
    _, H = w4.shape
    _, E = fcw.shape
    tb = _pick_tile(B)
    grid = (pl.cdiv(B, tb),)
    # NOTE(v7x): at large nh/tiles, put pipeline_mode=pl.Buffered(1) on the
    # constant-index weight specs to avoid double-buffering resident weights
    # against the 64 MiB VMEM; at nh=8 (w4 = 1 MiB bf16) it is irrelevant.
    return pl.pallas_call(
        _conv4_fc_kernel,
        out_shape=jax.ShapeDtypeStruct((B, E), jnp.float32),
        grid=grid,
        in_specs=[
            pl.BlockSpec((tb, K), lambda i: (i, 0)),
            pl.BlockSpec((K, H), lambda i: (0, 0)),   # resident
            pl.BlockSpec((H, E), lambda i: (0, 0)),   # resident
            pl.BlockSpec((1, E), lambda i: (0, 0)),   # resident
        ],
        out_specs=pl.BlockSpec((tb, E), lambda i: (i, 0)),
        compiler_params=pltpu.CompilerParams(
            dimension_semantics=("parallel",),
            vmem_limit_bytes=_vmem_limit_bytes()),
    )(x, w4, fcw, fcb)


# ---------------------------------------------------------------------------
# Host glue: NHWC patch extraction (true channel counts, single concatenate)
# ---------------------------------------------------------------------------

def _extract_patches(x, kh, kw, stride, pad):
    """x: (B, H, W, C) -> (B*Ho*Wo, kh*kw*C); tap order (kh, kw, C) matches
    the flattened weight layout."""
    B, H, W, C = x.shape
    Ho = (H + 2 * pad - kh) // stride + 1
    Wo = (W + 2 * pad - kw) // stride + 1
    xp = jnp.pad(x, ((0, 0), (pad, pad), (pad, pad), (0, 0))) if pad else x
    cols = [xp[:, i:i + stride * Ho:stride, j:j + stride * Wo:stride, :]
            for i in range(kh) for j in range(kw)]
    col = jnp.concatenate(cols, axis=-1)              # (B, Ho, Wo, kh*kw*C)
    return col.reshape(B * Ho * Wo, kh * kw * C), Ho, Wo


def conv_lrelu(x, w_mat, kh, kw, stride, pad):
    """NHWC conv (bias-free, per the reference) + LeakyReLU(0.2)."""
    B = x.shape[0]
    patches, Ho, Wo = _extract_patches(x, kh, kw, stride, pad)
    out = matmul_lrelu(patches, w_mat)                # (B*Ho*Wo, Cout) bf16
    return out.reshape(B, Ho, Wo, w_mat.shape[1])


# ---------------------------------------------------------------------------
# Parameters: PyTorch layout -> kernel layout (one-time conversion)
# ---------------------------------------------------------------------------

def init_params(key, n_hidden, n_embedd):
    """Raw parameters, PyTorch layout: conv (Cout, Cin, kh, kw), fc (E, 1024)."""
    ks = jax.random.split(key, 6)

    def conv_w(k, cout, cin, kh, kw):
        fan_in = cin * kh * kw
        return jax.random.normal(k, (cout, cin, kh, kw), jnp.float32) * (fan_in ** -0.5)

    return {
        "w1": conv_w(ks[0], n_hidden,     1,            4, 4),
        "w2": conv_w(ks[1], n_hidden * 2, n_hidden,     4, 4),
        "w3": conv_w(ks[2], n_hidden * 4, n_hidden * 2, 3, 3),
        "w4": conv_w(ks[3], 1024,         n_hidden * 4, 4, 4),
        "fc_w": jax.random.normal(ks[4], (n_embedd, 1024), jnp.float32) * (1024 ** -0.5),
        "fc_b": 0.1 * jax.random.normal(ks[5], (n_embedd,), jnp.float32),
    }


def prepare_params(raw):
    """conv (Cout, Cin, kh, kw) -> (kh*kw*Cin, Cout) bf16 with TRUE channel
    counts (no 128-padding inflating K); fc weight pre-transposed, bias (1, E)."""
    def conv_mat(w):
        cout, cin, kh, kw = w.shape
        wm = jnp.transpose(w, (2, 3, 1, 0))            # (kh, kw, Cin, Cout)
        return wm.reshape(kh * kw * cin, cout).astype(jnp.bfloat16)

    return {
        "w1": conv_mat(raw["w1"]),
        "w2": conv_mat(raw["w2"]),
        "w3": conv_mat(raw["w3"]),
        "w4": conv_mat(raw["w4"]),
        "fc_w": raw["fc_w"].T.astype(jnp.bfloat16),        # (1024, E)
        "fc_b": raw["fc_b"].reshape(1, -1).astype(jnp.float32),
    }


# ---------------------------------------------------------------------------
# Forward pass
# ---------------------------------------------------------------------------

def encoder_forward(params, x):
    """x: (B, 1, 28, 28) NCHW f32 (PyTorch layout) -> (B, n_embedd) f32."""
    B = x.shape[0]
    # Single cheap entry transpose to NHWC (C=1, effectively a reshape).
    x = jnp.transpose(x, (0, 2, 3, 1)).astype(jnp.bfloat16)
    z = conv_lrelu(x, params["w1"], 4, 4, 2, 1)        # (B, 14, 14, nh)
    z = conv_lrelu(z, params["w2"], 4, 4, 2, 1)        # (B,  7,  7, 2nh)
    z = conv_lrelu(z, params["w3"], 3, 3, 2, 1)        # (B,  4,  4, 4nh)
    # conv4 is 4x4/stride-1/pad-0 on a 4x4 map -> its im2col is a pure reshape;
    # conv4 matmul + LeakyReLU + Linear run fused in one Pallas kernel.
    z = z.reshape(B, -1)                               # (B, 16*4nh)
    return conv4_fc(z, params["w4"], params["fc_w"], params["fc_b"])


# ---------------------------------------------------------------------------
# Pure-JAX reference (f32, lax convs) for a correctness check
# ---------------------------------------------------------------------------

def encoder_reference(raw, x):
    z = x
    for w, (s, p) in ((raw["w1"], (2, 1)), (raw["w2"], (2, 1)),
                      (raw["w3"], (2, 1)), (raw["w4"], (1, 0))):
        z = jax.lax.conv_general_dilated(
            z, w, (s, s), [(p, p), (p, p)],
            dimension_numbers=("NCHW", "OIHW", "NCHW"))
        z = jnp.maximum(z, 0.2 * z)
    z = z.reshape(z.shape[0], -1)
    return z @ raw["fc_w"].T + raw["fc_b"]


if __name__ == "__main__":
    B, n_hidden, n_embedd = 2, 8, 32
    key = jax.random.PRNGKey(0)
    k_params, k_x = jax.random.split(key)
    raw = init_params(k_params, n_hidden, n_embedd)
    params = prepare_params(raw)
    # MNIST-shaped input: 28x28 so the final 4x4/stride-1/pad-0 conv collapses
    # the spatial dims to 1x1 and view(-1, 1024) is valid.
    x = jax.random.normal(k_x, (B, 1, 28, 28), jnp.float32)

    fwd = jax.jit(encoder_forward)
    y = jax.block_until_ready(fwd(params, x))
    assert y.shape == (B, n_embedd), y.shape
    assert y.dtype == jnp.float32

    y_ref = jax.block_until_ready(jax.jit(encoder_reference)(raw, x))
    err = float(jnp.max(jnp.abs(y - y_ref)))
    assert err < 5e-2, f"max abs err {err}"   # bf16 inputs / f32 accumulation
    print("KERNEL_OK")
</pallas_src>

<mosaic_0001>
module attributes {stable_mosaic.version = 11 : i64} {
  func.func @_mm_lrelu_kernel(%arg0: i32, %arg1: memref<200x16xbf16, #tpu.memory_space<vmem>>, %arg2: memref<16x8xbf16, #tpu.memory_space<vmem>>, %arg3: memref<200x8xbf16, #tpu.memory_space<vmem>>) attributes {dimension_semantics = [#tpu.dimension_semantics<parallel>], iteration_bounds = array<i64: 2>, scalar_prefetch = 0 : i64, scratch_operands = 0 : i64, tpu.core_type = #tpu.core_type<tc>, window_params = [{transform_indices = @transform_0, window_bounds = array<i64: 200, 16>}, {pipeline_mode = #tpu.pipeline_mode<synchronous>, transform_indices = @transform_1, window_bounds = array<i64: 16, 8>}, {transform_indices = @transform_2, window_bounds = array<i64: 200, 8>}]} {
    %c0 = arith.constant 0 : index
    %c0_0 = arith.constant 0 : index
    %0 = vector.load %arg1[%c0, %c0_0] : memref<200x16xbf16, #tpu.memory_space<vmem>>, vector<200x16xbf16>
    %c0_1 = arith.constant 0 : index
    %c0_2 = arith.constant 0 : index
    %1 = vector.load %arg2[%c0_1, %c0_2] : memref<16x8xbf16, #tpu.memory_space<vmem>>, vector<16x8xbf16>
    %cst = arith.constant dense<0.000000e+00> : vector<200x8xf32>
    %2 = tpu.matmul %0, %1, %cst {dimension_numbers = #tpu.dot_dimension_numbers<[1], [0], [0], [1], [0, 0, 1, 1], [], []>} : vector<200x16xbf16>, vector<16x8xbf16>, vector<200x8xf32> -> vector<200x8xf32>
    %cst_3 = arith.constant 2.000000e-01 : f32
    %3 = vector.broadcast %cst_3 : f32 to vector<200x8xf32>
    %4 = arith.mulf %3, %2 : vector<200x8xf32>
    %5 = arith.maximumf %2, %4 : vector<200x8xf32>
    %6 = arith.truncf %5 : vector<200x8xf32> to vector<200x8xbf16>
    %c0_4 = arith.constant 0 : index
    %c0_5 = arith.constant 0 : index
    %7 = vector.load %arg3[%c0_4, %c0_5] : memref<200x8xbf16, #tpu.memory_space<vmem>>, vector<200x8xbf16>
    tpu.vector_store %arg3[%c0_4, %c0_5], %6 {strides = array<i32>} : memref<200x8xbf16, #tpu.memory_space<vmem>>, vector<200x8xbf16>,
    return
  }
  func.func @transform_0(%arg0: i32) -> (i32, i32) {
    %c0_i32 = arith.constant 0 : i32
    %c0_i32_0 = arith.constant 0 : i32
    return %arg0, %c0_i32 : i32, i32
  }
  func.func @transform_1(%arg0: i32) -> (i32, i32) {
    %c0_i32 = arith.constant 0 : i32
    %c0_i32_0 = arith.constant 0 : i32
    %c0_i32_1 = arith.constant 0 : i32
    return %c0_i32, %c0_i32_0 : i32, i32
  }
  func.func @transform_2(%arg0: i32) -> (i32, i32) {
    %c0_i32 = arith.constant 0 : i32
    %c0_i32_0 = arith.constant 0 : i32
    return %arg0, %c0_i32 : i32, i32
  }
}

module attributes {stable_mosaic.version = 11 : i64} {
  func.func @_mm_lrelu_kernel(%arg0: i32, %arg1: memref<56x128xbf16, #tpu.memory_space<vmem>>, %arg2: memref<128x16xbf16, #tpu.memory_space<vmem>>, %arg3: memref<56x16xbf16, #tpu.memory_space<vmem>>) attributes {dimension_semantics = [#tpu.dimension_semantics<parallel>], iteration_bounds = array<i64: 2>, scalar_prefetch = 0 : i64, scratch_operands = 0 : i64, tpu.core_type = #tpu.core_type<tc>, window_params = [{transform_indices = @transform_0, window_bounds = array<i64: 56, 128>}, {pipeline_mode = #tpu.pipeline_mode<synchronous>, transform_indices = @transform_1, window_bounds = array<i64: 128, 16>}, {transform_indices = @transform_2, window_bounds = array<i64: 56, 16>}]} {
    %c0 = arith.constant 0 : index
    %c0_0 = arith.constant 0 : index
    %0 = vector.load %arg1[%c0, %c0_0] : memref<56x128xbf16, #tpu.memory_space<vmem>>, vector<56x128xbf16>
    %c0_1 = arith.constant 0 : index
    %c0_2 = arith.constant 0 : index
    %1 = vector.load %arg2[%c0_1, %c0_2] : memref<128x16xbf16, #tpu.memory_space<vmem>>, vector<128x16xbf16>
    %cst = arith.constant dense<0.000000e+00> : vector<56x16xf32>
    %2 = tpu.matmul %0, %1, %cst {dimension_numbers = #tpu.dot_dimension_numbers<[1], [0], [0], [1], [0, 0, 1, 1], [], []>} : vector<56x128xbf16>, vector<128x16xbf16>, vector<56x16xf32> -> vector<56x16xf32>
    %cst_3 = arith.constant 2.000000e-01 : f32
    %3 = vector.broadcast %cst_3 : f32 to vector<56x16xf32>
    %4 = arith.mulf %3, %2 : vector<56x16xf32>
    %5 = arith.maximumf %2, %4 : vector<56x16xf32>
    %6 = arith.truncf %5 : vector<56x16xf32> to vector<56x16xbf16>
    %c0_4 = arith.constant 0 : index
    %c0_5 = arith.constant 0 : index
    %7 = vector.load %arg3[%c0_4, %c0_5] : memref<56x16xbf16, #tpu.memory_space<vmem>>, vector<56x16xbf16>
    tpu.vector_store %arg3[%c0_4, %c0_5], %6 {strides = array<i32>} : memref<56x16xbf16, #tpu.memory_space<vmem>>, vector<56x16xbf16>,
    return
  }
  func.func @transform_0(%arg0: i32) -> (i32, i32) {
    %c0_i32 = arith.constant 0 : i32
    %c0_i32_0 = arith.constant 0 : i32
    return %arg0, %c0_i32 : i32, i32
  }
  func.func @transform_1(%arg0: i32) -> (i32, i32) {
    %c0_i32 = arith.constant 0 : i32
    %c0_i32_0 = arith.constant 0 : i32
    %c0_i32_1 = arith.constant 0 : i32
    return %c0_i32, %c0_i32_0 : i32, i32
  }
  func.func @transform_2(%arg0: i32) -> (i32, i32) {
    %c0_i32 = arith.constant 0 : i32
    %c0_i32_0 = arith.constant 0 : i32
    return %arg0, %c0_i32 : i32, i32
  }
}

module attributes {stable_mosaic.version = 11 : i64} {
  func.func @_conv4_fc_kernel(%arg0: i32, %arg1: memref<2x512xbf16, #tpu.memory_space<vmem>>, %arg2: memref<512x1024xbf16, #tpu.memory_space<vmem>>, %arg3: memref<1024x32xbf16, #tpu.memory_space<vmem>>, %arg4: memref<1x32xf32, #tpu.memory_space<vmem>>, %arg5: memref<2x32xf32, #tpu.memory_space<vmem>>) attributes {dimension_semantics = [#tpu.dimension_semantics<parallel>], iteration_bounds = array<i64: 1>, scalar_prefetch = 0 : i64, scratch_operands = 0 : i64, tpu.core_type = #tpu.core_type<tc>, window_params = [{transform_indices = @transform_0, window_bounds = array<i64: 2, 512>}, {pipeline_mode = #tpu.pipeline_mode<synchronous>, transform_indices = @transform_1, window_bounds = array<i64: 512, 1024>}, {pipeline_mode = #tpu.pipeline_mode<synchronous>, transform_indices = @transform_2, window_bounds = array<i64: 1024, 32>}, {pipeline_mode = #tpu.pipeline_mode<synchronous>, transform_indices = @transform_3, window_bounds = array<i64: 1, 32>}, {transform_indices = @transform_4, window_bounds = array<i64: 2, 32>}]} {
    %c0 = arith.constant 0 : index
    %c0_0 = arith.constant 0 : index
    %0 = vector.load %arg1[%c0, %c0_0] : memref<2x512xbf16, #tpu.memory_space<vmem>>, vector<2x512xbf16>
    %c0_1 = arith.constant 0 : index
    %c0_2 = arith.constant 0 : index
    %1 = vector.load %arg2[%c0_1, %c0_2] : memref<512x1024xbf16, #tpu.memory_space<vmem>>, vector<512x1024xbf16>
    %cst = arith.constant dense<0.000000e+00> : vector<2x1024xf32>
    %2 = tpu.matmul %0, %1, %cst {dimension_numbers = #tpu.dot_dimension_numbers<[1], [0], [0], [1], [0, 0, 1, 1], [], []>} : vector<2x512xbf16>, vector<512x1024xbf16>, vector<2x1024xf32> -> vector<2x1024xf32>
    %cst_3 = arith.constant 2.000000e-01 : f32
    %3 = vector.broadcast %cst_3 : f32 to vector<2x1024xf32>
    %4 = arith.mulf %3, %2 : vector<2x1024xf32>
    %5 = arith.maximumf %2, %4 : vector<2x1024xf32>
    %6 = arith.truncf %5 : vector<2x1024xf32> to vector<2x1024xbf16>
    %c0_4 = arith.constant 0 : index
    %c0_5 = arith.constant 0 : index
    %7 = vector.load %arg3[%c0_4, %c0_5] : memref<1024x32xbf16, #tpu.memory_space<vmem>>, vector<1024x32xbf16>
    %cst_6 = arith.constant dense<0.000000e+00> : vector<2x32xf32>
    %8 = tpu.matmul %6, %7, %cst_6 {dimension_numbers = #tpu.dot_dimension_numbers<[1], [0], [0], [1], [0, 0, 1, 1], [], []>} : vector<2x1024xbf16>, vector<1024x32xbf16>, vector<2x32xf32> -> vector<2x32xf32>
    %c0_7 = arith.constant 0 : index
    %c0_8 = arith.constant 0 : index
    %9 = vector.load %arg4[%c0_7, %c0_8] : memref<1x32xf32, #tpu.memory_space<vmem>>, vector<1x32xf32>
    %10 = vector.broadcast %9 : vector<1x32xf32> to vector<2x32xf32>
    %11 = arith.addf %8, %10 : vector<2x32xf32>
    %c0_9 = arith.constant 0 : index
    %c0_10 = arith.constant 0 : index
    %12 = vector.load %arg5[%c0_9, %c0_10] : memref<2x32xf32, #tpu.memory_space<vmem>>, vector<2x32xf32>
    tpu.vector_store %arg5[%c0_9, %c0_10], %11 {strides = array<i32>} : memref<2x32xf32, #tpu.memory_space<vmem>>, vector<2x32xf32>,
    return
  }
  func.func @transform_0(%arg0: i32) -> (i32, i32) {
    %c0_i32 = arith.constant 0 : i32
    %c0_i32_0 = arith.constant 0 : i32
    return %arg0, %c0_i32 : i32, i32
  }
  func.func @transform_1(%arg0: i32) -> (i32, i32) {
    %c0_i32 = arith.constant 0 : i32
    %c0_i32_0 = arith.constant 0 : i32
    %c0_i32_1 = arith.constant 0 : i32
    return %c0_i32, %c0_i32_0 : i32, i32
  }
  func.func @transform_2(%arg0: i32) -> (i32, i32) {
    %c0_i32 = arith.constant 0 : i32
    %c0_i32_0 = arith.constant 0 : i32
    %c0_i32_1 = arith.constant 0 : i32
    return %c0_i32, %c0_i32_0 : i32, i32
  }
  func.func @transform_3(%arg0: i32) -> (i32, i32) {
    %c0_i32 = arith.constant 0 : i32
    %c0_i32_0 = arith.constant 0 : i32
    %c0_i32_1 = arith.constant 0 : i32
    return %c0_i32, %c0_i32_0 : i32, i32
  }
  func.func @transform_4(%arg0: i32) -> (i32, i32) {
    %c0_i32 = arith.constant 0 : i32
    %c0_i32_0 = arith.constant 0 : i32
    return %arg0, %c0_i32 : i32, i32
  }
}

module attributes {stable_mosaic.version = 11 : i64} {
  func.func @_mm_lrelu_kernel(%arg0: i32, %arg1: memref<16x144xbf16, #tpu.memory_space<vmem>>, %arg2: memref<144x32xbf16, #tpu.memory_space<vmem>>, %arg3: memref<16x32xbf16, #tpu.memory_space<vmem>>) attributes {dimension_semantics = [#tpu.dimension_semantics<parallel>], iteration_bounds = array<i64: 2>, scalar_prefetch = 0 : i64, scratch_operands = 0 : i64, tpu.core_type = #tpu.core_type<tc>, window_params = [{transform_indices = @transform_0, window_bounds = array<i64: 16, 144>}, {pipeline_mode = #tpu.pipeline_mode<synchronous>, transform_indices = @transform_1, window_bounds = array<i64: 144, 32>}, {transform_indices = @transform_2, window_bounds = array<i64: 16, 32>}]} {
    %c0 = arith.constant 0 : index
    %c0_0 = arith.constant 0 : index
    %0 = vector.load %arg1[%c0, %c0_0] : memref<16x144xbf16, #tpu.memory_space<vmem>>, vector<16x144xbf16>
    %c0_1 = arith.constant 0 : index
    %c0_2 = arith.constant 0 : index
    %1 = vector.load %arg2[%c0_1, %c0_2] : memref<144x32xbf16, #tpu.memory_space<vmem>>, vector<144x32xbf16>
    %cst = arith.constant dense<0.000000e+00> : vector<16x32xf32>
    %2 = tpu.matmul %0, %1, %cst {dimension_numbers = #tpu.dot_dimension_numbers<[1], [0], [0], [1], [0, 0, 1, 1], [], []>} : vector<16x144xbf16>, vector<144x32xbf16>, vector<16x32xf32> -> vector<16x32xf32>
    %cst_3 = arith.constant 2.000000e-01 : f32
    %3 = vector.broadcast %cst_3 : f32 to vector<16x32xf32>
    %4 = arith.mulf %3, %2 : vector<16x32xf32>
    %5 = arith.maximumf %2, %4 : vector<16x32xf32>
    %6 = arith.truncf %5 : vector<16x32xf32> to vector<16x32xbf16>
    %c0_4 = arith.constant 0 : index
    %c0_5 = arith.constant 0 : index
    %7 = vector.load %arg3[%c0_4, %c0_5] : memref<16x32xbf16, #tpu.memory_space<vmem>>, vector<16x32xbf16>
    tpu.vector_store %arg3[%c0_4, %c0_5], %6 {strides = array<i32>} : memref<16x32xbf16, #tpu.memory_space<vmem>>, vector<16x32xbf16>,
    return
  }
  func.func @transform_0(%arg0: i32) -> (i32, i32) {
    %c0_i32 = arith.constant 0 : i32
    %c0_i32_0 = arith.constant 0 : i32
    return %arg0, %c0_i32 : i32, i32
  }
  func.func @transform_1(%arg0: i32) -> (i32, i32) {
    %c0_i32 = arith.constant 0 : i32
    %c0_i32_0 = arith.constant 0 : i32
    %c0_i32_1 = arith.constant 0 : i32
    return %c0_i32, %c0_i32_0 : i32, i32
  }
  func.func @transform_2(%arg0: i32) -> (i32, i32) {
    %c0_i32 = arith.constant 0 : i32
    %c0_i32_0 = arith.constant 0 : i32
    return %arg0, %c0_i32 : i32, i32
  }
}

</mosaic_0001>

<bundles_post_ra>
// kernel: encoder_forward.4
= control target key start
LH: loop header
LB: loop body
LE: loop exit
PB: predicated region body
PF: predicated region fallthrough
CT: control target
= control target key end

     0   :  { %s1309_s9 = smov 0   ;;  %s1311_s10 = smov 0   ;;  %s1559_s0 = inlined_call_operand.vmem [shape: bf16[392,16], index: 0, kind: input, shape index: {}]   ;;  %s1560_s1 = inlined_call_operand.vmem [shape: bf16[16,8], index: 1, kind: input, shape index: {}]   ;;  %s1561_s2 = inlined_call_operand.vmem [shape: bf16[392,8], index: 2, kind: output, shape index: {}]  }
   0x1   :  { %s1313_s11 = smov 0  }
   0x2 LB: > { %s1322_s12 = sadd.s32 4294967295, %s1258_s11   ;;  %s1324_s13 = sadd.s32 1, %s1258_s11   ;;  %s1258_s11 = sphi %s1313_s11, %s1568_s11   ;;  %s1254_s10 = sphi %s1311_s10, %s1567_s10   ;;  %s1250_s9 = sphi %s1309_s9, %s1566_s9  }
   0x3   : > { %s63_s14 = ssub.s32 %s1258_s11, %s1324_s13  ;;  %s66_s15 = sadd.s32 1, %s1254_s10 }
   0x4   : > { %p64_p0 = scmp.eq.s32.totalorder %s63_s14, 0  ;;  %p76_p1 = scmp.ne.s32.totalorder %s1254_s10, %s1250_s9 }
   0x5   : > { %p77_p2 = scmp.eq.s32.totalorder %s1322_s12, 1  ;;  %p932_p3 = scmp.ge.s32.totalorder %s1258_s11, 1 }
   0x6   : > { %s1332_s16 = scalar_select %p64_p0, %s1254_s10, %s66_s15  }
   0x7   : > { %p1334_p4 = por %p77_p2, %p76_p1  ;;  %p121_p5 = scmp.lt.s32.totalorder %s1258_s11, 3 }
   0x9   : > { %p122_p6 = pnand %p932_p3, %p121_p5 }
   0xa   : > { %s1342_s20 = smul.u32 (!%p122_p6), 25, %s1322_s12  ;;  %s143_s26 = sand.u32 (!%p122_p6), 1, %s1250_s9  }
   0xb   : > { %125 = sbr.rel (%p122_p6) target bundleno = 343 (0x157), region = 28 }
   0xc   : > { %p151_p7 = scmp.lt.s32.totalorder (!%p122_p6), %s1342_s20, 48  ;;  %s1094_s27 = smul.u32 (!%p122_p6), 100, %s143_s26 }
   0xe   : > { %s1391_s28 = scalar_lea.vmem (!%p122_p6), [#allocation2], %s1094_s27  }
  0x10   : > { %v1186_v0 = vld [vmem:[%s1560_s1] sm:$0xff]   ;;  %v1292_v1 = vmov 0.0   ;;  %vm1293_vm0 = vmmov 0   ;;  %s152_s21 = scalar_select %p151_p7, %s1342_s20, 48  ;;  %vm262_vm1 = vcmask 130048   ;;  %vm589_vm2 = vcmask 60416  }
  0x11   : > { %1038 = vmatprep.subr.bf16.mxu0 %v1292_v1  ;;  %1092 = vmatprep.subr.bf16.mxu1 %v1292_v1  ;;  %s623_s29 = ssub.s32 (%p1334_p4), 49, %s1342_s20  ;;  %s1023_s30 = smul.u32 (%p1334_p4), 100, %s1322_s12 }
  0x12   : > { %1039 = vmatpush3.bf16.msra.mxu0 %v1186_v0  ;;  %1040 = vmatprep.mubr.msk.bf16.mxu0 %vm1293_vm0, %v1292_v1  ;;  %s933_s22 = sshll.u32 %s152_s21, 2  ;;  %p624_p8 = scmp.lt.s32.totalorder (%p1334_p4), %s623_s29, 25 }
  0x13   : > { %1093 = vmatpush3.bf16.msra.mxu1 %v1186_v0  ;;  %1068 = vmatprep.mubr.msk.bf16.mxu1 %vm1293_vm0, %v1292_v1  ;;  %s1351_s25 = scalar_lea.vmem %s1559_s0, %s933_s22  ;;  %s1450_s5 = scalar_lea.vmem (%p1334_p4), %s1561_s2, %s1023_s30  }
  0x14   : > { %v1187_v2 = vld [vmem:[%s1351_s25] sm:$0xff]   ;;  %v1188_v3 = vld [vmem:[%s1351_s25 + $0x38] sm:$0xff]   ;;  %v1189_v4 = vld [vmem:[%s1351_s25 + $0x8] sm:$0xff]  }
  0x15   : > { %1041 = vmatmul.mubr.msk.bf16.vlgmr.msra.gmra.mxu0 %vm262_vm1, %v1187_v2  ;;  %v1190_v5 = vld [vmem:[%s1351_s25 + $0x40] sm:$0xff]   ;;  %v1191_v6 = vld [vmem:[%s1351_s25 + $0x10] sm:$0xff]   ;;  %v1192_v7 = vld [vmem:[%s1351_s25 + $0x48] sm:$0xff]  }
  0x16   : > { %1069 = vmatmul.mubr.msk.bf16.vlgmr.msra.gmra.mxu1 %vm262_vm1, %v1188_v3  ;;  %1044 = vmatprep.mubr.msk.bf16.mxu0 %vm1293_vm0, %v1292_v1  ;;  %v1193_v8 = vld [vmem:[%s1351_s25 + $0x18] sm:$0xff]   ;;  %v1194_v9 = vld [vmem:[%s1351_s25 + $0x50] sm:$0xff]   ;;  %v1195_v10 = vld [vmem:[%s1351_s25 + $0x20] sm:$0xff]  }
  0x17   : > { %1072 = vmatprep.mubr.msk.bf16.mxu1 %vm1293_vm0, %v1292_v1  ;;  %v1196_v11 = vld [vmem:[%s1351_s25 + $0x58] sm:$0xff]   ;;  %v1197_v12 = vld [vmem:[%s1351_s25 + $0x28] sm:$0xff]   ;;  %v1198_v13 = vld [vmem:[%s1351_s25 + $0x60] ss:$0 sps:$4 sm:$0xff]  }
  0x18   : > { %v1199_v14 = vld [vmem:[%s1351_s25 + $0x30] sm:$0xff]  }
  0x1d   : > { %1045 = vmatmul.mubr.msk.bf16.gmra.mxu0 %vm262_vm1, %v1189_v4 }
  0x1e   : > { %1073 = vmatmul.mubr.msk.bf16.gmra.mxu1 %vm262_vm1, %v1190_v5  ;;  %1048 = vmatprep.mubr.msk.bf16.mxu0 %vm1293_vm0, %v1292_v1 }
  0x1f   : > { %1076 = vmatprep.mubr.msk.bf16.mxu1 %vm1293_vm0, %v1292_v1 }
  0x25   : > { %1049 = vmatmul.mubr.msk.bf16.gmra.mxu0 %vm262_vm1, %v1191_v6 }
  0x26   : > { %1077 = vmatmul.mubr.msk.bf16.gmra.mxu1 %vm262_vm1, %v1192_v7  ;;  %1052 = vmatprep.mubr.msk.bf16.mxu0 %vm1293_vm0, %v1292_v1 }
  0x27   : > { %1080 = vmatprep.mubr.msk.bf16.mxu1 %vm1293_vm0, %v1292_v1 }
  0x2d   : > { %1053 = vmatmul.mubr.msk.bf16.gmra.mxu0 %vm262_vm1, %v1193_v8 }
  0x2e   : > { %1081 = vmatmul.mubr.msk.bf16.gmra.mxu1 %vm262_vm1, %v1194_v9  ;;  %1056 = vmatprep.mubr.msk.bf16.mxu0 %vm1293_vm0, %v1292_v1 }
  0x2f   : > { %1084 = vmatprep.mubr.msk.bf16.mxu1 %vm1293_vm0, %v1292_v1 }
  0x35   : > { %1057 = vmatmul.mubr.msk.bf16.gmra.mxu0 %vm262_vm1, %v1195_v10 }
  0x36   : > { %1085 = vmatmul.mubr.msk.bf16.gmra.mxu1 %vm262_vm1, %v1196_v11  ;;  %1060 = vmatprep.mubr.msk.bf16.mxu0 %vm1293_vm0, %v1292_v1 }
  0x37   : > { %1088 = vmatprep.mubr.msk.bf16.mxu1 %vm1293_vm0, %v1292_v1 }
  0x3d   : > { %1061 = vmatmul.mubr.msk.bf16.gmra.mxu0 %vm262_vm1, %v1197_v12 }
  0x3e   : > { %1089 = vmatmul.mubr.msk.bf16.gmra.mxu1 %vm262_vm1, %v1198_v13  ;;  %1064 = vmatprep.mubr.msk.bf16.mxu0 %vm1293_vm0, %v1292_v1 }
  0x45   : > { %1065 = vmatmul.mubr.msk.bf16.gmra.mxu0 %vm262_vm1, %v1199_v14 }
  0xd5   : > { %v336_v15 = vpop.f32.mrf.mxu0 }
  0xd6   : > { %v438_v16 = vmul.f32 0.2, %v336_v15  ;;  %v392_v17 = vpop.f32.mrf.mxu1 }
  0xd7   : > { %v1042_v18 = vpop.f32.mrf.mxu0  ;;  %v452_v19 = vmul.f32 0.2, %v392_v17 }
  0xd8   : > { %v463_v20 = vmax.f32 %v336_v15, %v438_v16  ;;  %v1070_v21 = vpop.f32.mrf.mxu1 }
  0xd9   : > { %v339_v22 = vpop.f32.mrf.mxu0  ;;  %v477_v23 = vmax.f32 %v392_v17, %v452_v19 }
  0xda   : > { %v998_v24 = vpack.c.bf16 %v463_v20, %v463_v20  ;;  %v439_v25 = vmul.f32 0.2, %v339_v22  ;;  %v395_v26 = vpop.f32.mrf.mxu1 }
  0xdb   : > { %v1043_v27 = vpop.f32.mrf.mxu0  ;;  %v1012_v28 = vpack.c.bf16 %v477_v23, %v477_v23  ;;  %v453_v29 = vmul.f32 0.2, %v395_v26 }
  0xdc   : > { %590 = vst.msk [vmem:[%s1391_s28] sm:$0xf] %vm589_vm2, %v998_v24  ;;  %v464_v30 = vmax.f32 %v339_v22, %v439_v25  ;;  %v1071_v31 = vpop.f32.mrf.mxu1 }
  0xdd   : > { %604 = vst.msk [vmem:[%s1391_s28 + $0x38] sm:$0xf] %vm589_vm2, %v1012_v28  ;;  %v344_v32 = vpop.f32.mrf.mxu0  ;;  %v478_v33 = vmax.f32 %v395_v26, %v453_v29 }
  0xde   : > { %v999_v34 = vpack.c.bf16 %v464_v30, %v464_v30  ;;  %v440_v35 = vmul.f32 0.2, %v344_v32  ;;  %v400_v36 = vpop.f32.mrf.mxu1 }
  0xdf   : > { %v1046_v37 = vpop.f32.mrf.mxu0  ;;  %v1013_v38 = vpack.c.bf16 %v478_v33, %v478_v33  ;;  %v454_v39 = vmul.f32 0.2, %v400_v36 }
  0xe0   : > { %591 = vst.msk [vmem:[%s1391_s28 + $0x4] sm:$0xf] %vm589_vm2, %v999_v34  ;;  %v465_v40 = vmax.f32 %v344_v32, %v440_v35  ;;  %v1074_v41 = vpop.f32.mrf.mxu1 }
  0xe1   : > { %605 = vst.msk [vmem:[%s1391_s28 + $0x3c] sm:$0xf] %vm589_vm2, %v1013_v38  ;;  %v347_v42 = vpop.f32.mrf.mxu0  ;;  %v479_v43 = vmax.f32 %v400_v36, %v454_v39 }
  0xe2   : > { %v1000_v44 = vpack.c.bf16 %v465_v40, %v465_v40  ;;  %v441_v45 = vmul.f32 0.2, %v347_v42  ;;  %v403_v46 = vpop.f32.mrf.mxu1 }
  0xe3   : > { %v1047_v47 = vpop.f32.mrf.mxu0  ;;  %v1014_v48 = vpack.c.bf16 %v479_v43, %v479_v43  ;;  %v455_v49 = vmul.f32 0.2, %v403_v46 }
  0xe4   : > { %592 = vst.msk [vmem:[%s1391_s28 + $0x8] sm:$0xf] %vm589_vm2, %v1000_v44  ;;  %v466_v50 = vmax.f32 %v347_v42, %v441_v45  ;;  %v1075_v51 = vpop.f32.mrf.mxu1 }
  0xe5   : > { %606 = vst.msk [vmem:[%s1391_s28 + $0x40] sm:$0xf] %vm589_vm2, %v1014_v48  ;;  %v352_v52 = vpop.f32.mrf.mxu0  ;;  %v480_v53 = vmax.f32 %v403_v46, %v455_v49 }
  0xe6   : > { %v1001_v54 = vpack.c.bf16 %v466_v50, %v466_v50  ;;  %v442_v55 = vmul.f32 0.2, %v352_v52  ;;  %v408_v56 = vpop.f32.mrf.mxu1 }
  0xe7   : > { %v1050_v57 = vpop.f32.mrf.mxu0  ;;  %v1015_v58 = vpack.c.bf16 %v480_v53, %v480_v53  ;;  %v456_v59 = vmul.f32 0.2, %v408_v56 }
  0xe8   : > { %593 = vst.msk [vmem:[%s1391_s28 + $0xc] sm:$0xf] %vm589_vm2, %v1001_v54  ;;  %v467_v60 = vmax.f32 %v352_v52, %v442_v55  ;;  %v1078_v61 = vpop.f32.mrf.mxu1 }
  0xe9   : > { %607 = vst.msk [vmem:[%s1391_s28 + $0x44] sm:$0xf] %vm589_vm2, %v1015_v58  ;;  %v355_v62 = vpop.f32.mrf.mxu0  ;;  %v481_v63 = vmax.f32 %v408_v56, %v456_v59 }
  0xea   : > { %v1002_v0 = vpack.c.bf16 %v467_v60, %v467_v60  ;;  %v443_v1 = vmul.f32 0.2, %v355_v62  ;;  %v411_v2 = vpop.f32.mrf.mxu1 }
  0xeb   : > { %v1051_v3 = vpop.f32.mrf.mxu0  ;;  %v1016_v4 = vpack.c.bf16 %v481_v63, %v481_v63  ;;  %v457_v5 = vmul.f32 0.2, %v411_v2 }
  0xec   : > { %594 = vst.msk [vmem:[%s1391_s28 + $0x10] sm:$0xf] %vm589_vm2, %v1002_v0  ;;  %v468_v6 = vmax.f32 %v355_v62, %v443_v1  ;;  %v1079_v7 = vpop.f32.mrf.mxu1 }
  0xed   : > { %608 = vst.msk [vmem:[%s1391_s28 + $0x48] sm:$0xf] %vm589_vm2, %v1016_v4  ;;  %v360_v8 = vpop.f32.mrf.mxu0  ;;  %v482_v9 = vmax.f32 %v411_v2, %v457_v5 }
  0xee   : > { %v1003_v10 = vpack.c.bf16 %v468_v6, %v468_v6  ;;  %v444_v11 = vmul.f32 0.2, %v360_v8  ;;  %v416_v12 = vpop.f32.mrf.mxu1 }
  0xef   : > { %v1054_v13 = vpop.f32.mrf.mxu0  ;;  %v1017_v14 = vpack.c.bf16 %v482_v9, %v482_v9  ;;  %v458_v15 = vmul.f32 0.2, %v416_v12 }
  0xf0   : > { %595 = vst.msk [vmem:[%s1391_s28 + $0x14] sm:$0xf] %vm589_vm2, %v1003_v10  ;;  %v469_v16 = vmax.f32 %v360_v8, %v444_v11  ;;  %v1082_v17 = vpop.f32.mrf.mxu1 }
  0xf1   : > { %609 = vst.msk [vmem:[%s1391_s28 + $0x4c] sm:$0xf] %vm589_vm2, %v1017_v14  ;;  %v363_v18 = vpop.f32.mrf.mxu0  ;;  %v483_v19 = vmax.f32 %v416_v12, %v458_v15 }
  0xf2   : > { %v1004_v20 = vpack.c.bf16 %v469_v16, %v469_v16  ;;  %v445_v21 = vmul.f32 0.2, %v363_v18  ;;  %v419_v22 = vpop.f32.mrf.mxu1 }
  0xf3   : > { %v1055_v23 = vpop.f32.mrf.mxu0  ;;  %v1018_v24 = vpack.c.bf16 %v483_v19, %v483_v19  ;;  %v459_v25 = vmul.f32 0.2, %v419_v22 }
  0xf4   : > { %596 = vst.msk [vmem:[%s1391_s28 + $0x18] sm:$0xf] %vm589_vm2, %v1004_v20  ;;  %v470_v26 = vmax.f32 %v363_v18, %v445_v21  ;;  %v1083_v27 = vpop.f32.mrf.mxu1 }
  0xf5   : > { %610 = vst.msk [vmem:[%s1391_s28 + $0x50] sm:$0xf] %vm589_vm2, %v1018_v24  ;;  %v368_v28 = vpop.f32.mrf.mxu0  ;;  %v484_v29 = vmax.f32 %v419_v22, %v459_v25 }
  0xf6   : > { %v1005_v30 = vpack.c.bf16 %v470_v26, %v470_v26  ;;  %v446_v31 = vmul.f32 0.2, %v368_v28  ;;  %v424_v32 = vpop.f32.mrf.mxu1 }
  0xf7   : > { %v1058_v33 = vpop.f32.mrf.mxu0  ;;  %v1019_v34 = vpack.c.bf16 %v484_v29, %v484_v29  ;;  %v460_v35 = vmul.f32 0.2, %v424_v32 }
  0xf8   : > { %597 = vst.msk [vmem:[%s1391_s28 + $0x1c] sm:$0xf] %vm589_vm2, %v1005_v30  ;;  %v471_v36 = vmax.f32 %v368_v28, %v446_v31  ;;  %v1086_v37 = vpop.f32.mrf.mxu1 }
  0xf9   : > { %611 = vst.msk [vmem:[%s1391_s28 + $0x54] sm:$0xf] %vm589_vm2, %v1019_v34  ;;  %v371_v38 = vpop.f32.mrf.mxu0  ;;  %v485_v39 = vmax.f32 %v424_v32, %v460_v35 }
  0xfa   : > { %v1006_v40 = vpack.c.bf16 %v471_v36, %v471_v36  ;;  %v447_v41 = vmul.f32 0.2, %v371_v38  ;;  %v427_v42 = vpop.f32.mrf.mxu1 }
  0xfb   : > { %v1059_v43 = vpop.f32.mrf.mxu0  ;;  %v1020_v44 = vpack.c.bf16 %v485_v39, %v485_v39  ;;  %v461_v45 = vmul.f32 0.2, %v427_v42 }
  0xfc   : > { %598 = vst.msk [vmem:[%s1391_s28 + $0x20] sm:$0xf] %vm589_vm2, %v1006_v40  ;;  %v472_v46 = vmax.f32 %v371_v38, %v447_v41  ;;  %v1087_v47 = vpop.f32.mrf.mxu1 }
  0xfd   : > { %612 = vst.msk [vmem:[%s1391_s28 + $0x58] sm:$0xf] %vm589_vm2, %v1020_v44  ;;  %v376_v48 = vpop.f32.mrf.mxu0  ;;  %v486_v49 = vmax.f32 %v427_v42, %v461_v45 }
  0xfe   : > { %v1007_v50 = vpack.c.bf16 %v472_v46, %v472_v46  ;;  %v448_v51 = vmul.f32 0.2, %v376_v48  ;;  %v432_v52 = vpop.f32.mrf.mxu1 }
  0xff   : > { %v1062_v53 = vpop.f32.mrf.mxu0  ;;  %v1021_v54 = vpack.c.bf16 %v486_v49, %v486_v49  ;;  %v462_v55 = vmul.f32 0.2, %v432_v52 }
 0x100   : > { %599 = vst.msk [vmem:[%s1391_s28 + $0x24] sm:$0xf] %vm589_vm2, %v1007_v50  ;;  %v473_v56 = vmax.f32 %v376_v48, %v448_v51  ;;  %v1090_v57 = vpop.f32.mrf.mxu1 }
 0x101   : > { %613 = vst.msk [vmem:[%s1391_s28 + $0x5c] sm:$0xf] %vm589_vm2, %v1021_v54  ;;  %v379_v58 = vpop.f32.mrf.mxu0  ;;  %v487_v59 = vmax.f32 %v432_v52, %v462_v55 }
 0x102   : > { %v1008_v60 = vpack.c.bf16 %v473_v56, %v473_v56  ;;  %v449_v61 = vmul.f32 0.2, %v379_v58  ;;  %v435_v62 = vpop.f32.mrf.mxu1 }
 0x103   : > { %v1063_v63 = vpop.f32.mrf.mxu0  ;;  %v1022_v0 = vpack.c.bf16 %v487_v59, %v487_v59 }
 0x104   : > { %600 = vst.msk [vmem:[%s1391_s28 + $0x28] sm:$0xf] %vm589_vm2, %v1008_v60  ;;  %v474_v1 = vmax.f32 %v379_v58, %v449_v61  ;;  %v1091_v2 = vpop.f32.mrf.mxu1 }
 0x105   : > { %614 = vst.msk [vmem:[%s1391_s28 + $0x60] sm:$0xf] %vm589_vm2, %v1022_v0  ;;  %v384_v3 = vpop.f32.mrf.mxu0 }
 0x106   : > { %v1009_v4 = vpack.c.bf16 %v474_v1, %v474_v1  ;;  %v450_v5 = vmul.f32 0.2, %v384_v3 }
 0x107   : > { %v1066_v6 = vpop.f32.mrf.mxu0 }
 0x108   : > { %601 = vst.msk [vmem:[%s1391_s28 + $0x2c] sm:$0xf] %vm589_vm2, %v1009_v4  ;;  %v475_v7 = vmax.f32 %v384_v3, %v450_v5 }
 0x109   : > { %v387_v8 = vpop.f32.mrf.mxu0 }
 0x10a   : > { %v1010_v9 = vpack.c.bf16 %v475_v7, %v475_v7  ;;  %v451_v10 = vmul.f32 0.2, %v387_v8 }
 0x10b   : > { %v1067_v11 = vpop.f32.mrf.mxu0 }
 0x10c   : > { %602 = vst.msk [vmem:[%s1391_s28 + $0x30] sm:$0xf] %vm589_vm2, %v1010_v9  ;;  %v476_v12 = vmax.f32 %v387_v8, %v451_v10  ;;  %621 = sbr.rel (!%p1334_p4) target bundleno = 343 (0x157), region = 32 }
 0x10e   : > { %v1011_v13 = vpack.c.bf16 %v476_v12, %v476_v12 }
 0x110   : > { %603 = vst.msk [vmem:[%s1391_s28 + $0x34] sm:$0xf] %vm589_vm2, %v1011_v13 }
 0x111   : > { %s1570_s29 = smov (!%p624_p8, %s623_s29), 25 }
 0x112   : > { %s986_s6 = sshll.u32 %s1570_s29, 6 }
 0x113   : > { %p989_p9 = scmp.eq.s32.totalorder %s986_s6, 0 }
 0x114   : > { %1200 = sdivrem.u32 (!%p989_p9), %s1570_s29, 25 }
 0x115   : > { %632 = sbr.rel (%p989_p9) target bundleno = 343 (0x157), region = 36 }
 0x11d   : > { %s1456_s7 = spop.drf %1200 }
 0x11e   : > { %p990_p10 = scmp.le.s32.totalorder %s1456_s7, 0 }
 0x11f   : > { %s1563_s8 = smov (!%p990_p10), %s1450_s5  ;;  %s1564_s9 = smov (!%p990_p10), %s1391_s28 }
 0x120   : > { %885 = sbr.rel (%p990_p10) target bundleno = 318 (0x13e), region = 108  ;;  %s1465_s11 = smov (!%p990_p10), 0  }
 0x121   : > { %s1467_s12 = smov (!%p990_p10), 0  }
 0x125 LB: >> { %v650_v14 = vld [vmem:[%s1266_s9] sm:$0xf]  ;;  %v652_v15 = vld [vmem:[%s1266_s9 + $0x4] sm:$0xf]  ;;  %v654_v16 = vld [vmem:[%s1266_s9 + $0x8] sm:$0xf]  ;;  %s1274_s12 = sphi %s1467_s12, %s644_s12   ;;  %s1270_s11 = sphi %s1465_s11, %s1565_s11   ;;  %s1266_s9 = sphi %s1564_s9, %s705_s9   ;;  %s1262_s8 = sphi %s1563_s8, %s706_s8  }
 0x126   : >> { %651 = vst [vmem:[%s1262_s8] sm:$0xf] %v650_v14  ;;  %653 = vst [vmem:[%s1262_s8 + $0x4] sm:$0xf] %v652_v15  ;;  %v656_v17 = vld [vmem:[%s1266_s9 + $0xc] sm:$0xf]  ;;  %s700_s14 = sadd.s32 1, %s1270_s11 }
 0x127   : >> { %655 = vst [vmem:[%s1262_s8 + $0x8] sm:$0xf] %v654_v16  ;;  %v658_v18 = vld [vmem:[%s1266_s9 + $0x10] sm:$0xf]  ;;  %v660_v19 = vld [vmem:[%s1266_s9 + $0x14] sm:$0xf]  ;;  %p701_p11 = scmp.ge.s32.totalorder %s700_s14, %s1456_s7 }
 0x128   : >> { %657 = vst [vmem:[%s1262_s8 + $0xc] sm:$0xf] %v656_v17  ;;  %659 = vst [vmem:[%s1262_s8 + $0x10] sm:$0xf] %v658_v18  ;;  %v662_v20 = vld [vmem:[%s1266_s9 + $0x18] sm:$0xf] }
 0x129   : >> { %661 = vst [vmem:[%s1262_s8 + $0x14] sm:$0xf] %v660_v19  ;;  %v664_v21 = vld [vmem:[%s1266_s9 + $0x1c] sm:$0xf]  ;;  %v666_v22 = vld [vmem:[%s1266_s9 + $0x20] sm:$0xf] }
 0x12a   : >> { %663 = vst [vmem:[%s1262_s8 + $0x18] sm:$0xf] %v662_v20  ;;  %665 = vst [vmem:[%s1262_s8 + $0x1c] sm:$0xf] %v664_v21  ;;  %v668_v23 = vld [vmem:[%s1266_s9 + $0x24] sm:$0xf] }
 0x12b   : >> { %667 = vst [vmem:[%s1262_s8 + $0x20] sm:$0xf] %v666_v22  ;;  %v670_v24 = vld [vmem:[%s1266_s9 + $0x28] sm:$0xf]  ;;  %v672_v25 = vld [vmem:[%s1266_s9 + $0x2c] sm:$0xf] }
 0x12c   : >> { %669 = vst [vmem:[%s1262_s8 + $0x24] sm:$0xf] %v668_v23  ;;  %671 = vst [vmem:[%s1262_s8 + $0x28] sm:$0xf] %v670_v24  ;;  %v674_v26 = vld [vmem:[%s1266_s9 + $0x30] sm:$0xf] }
 0x12d   : >> { %673 = vst [vmem:[%s1262_s8 + $0x2c] sm:$0xf] %v672_v25  ;;  %v676_v27 = vld [vmem:[%s1266_s9 + $0x34] sm:$0xf]  ;;  %v678_v28 = vld [vmem:[%s1266_s9 + $0x38] sm:$0xf] }
 0x12e   : >> { %675 = vst [vmem:[%s1262_s8 + $0x30] sm:$0xf] %v674_v26  ;;  %677 = vst [vmem:[%s1262_s8 + $0x34] sm:$0xf] %v676_v27  ;;  %v680_v29 = vld [vmem:[%s1266_s9 + $0x3c] sm:$0xf] }
 0x12f   : >> { %679 = vst [vmem:[%s1262_s8 + $0x38] sm:$0xf] %v678_v28  ;;  %v682_v30 = vld [vmem:[%s1266_s9 + $0x40] sm:$0xf]  ;;  %v684_v31 = vld [vmem:[%s1266_s9 + $0x44] sm:$0xf] }
 0x130   : >> { %681 = vst [vmem:[%s1262_s8 + $0x3c] sm:$0xf] %v680_v29  ;;  %683 = vst [vmem:[%s1262_s8 + $0x40] sm:$0xf] %v682_v30  ;;  %v686_v32 = vld [vmem:[%s1266_s9 + $0x48] sm:$0xf] }
 0x131   : >> { %685 = vst [vmem:[%s1262_s8 + $0x44] sm:$0xf] %v684_v31  ;;  %v688_v33 = vld [vmem:[%s1266_s9 + $0x4c] sm:$0xf]  ;;  %v690_v34 = vld [vmem:[%s1266_s9 + $0x50] sm:$0xf] }
 0x132   : >> { %687 = vst [vmem:[%s1262_s8 + $0x48] sm:$0xf] %v686_v32  ;;  %689 = vst [vmem:[%s1262_s8 + $0x4c] sm:$0xf] %v688_v33  ;;  %v692_v35 = vld [vmem:[%s1266_s9 + $0x54] sm:$0xf] }
 0x133   : >> { %691 = vst [vmem:[%s1262_s8 + $0x50] sm:$0xf] %v690_v34  ;;  %v694_v36 = vld [vmem:[%s1266_s9 + $0x58] sm:$0xf]  ;;  %v696_v37 = vld [vmem:[%s1266_s9 + $0x5c] sm:$0xf] }
 0x134   : >> { %693 = vst [vmem:[%s1262_s8 + $0x54] sm:$0xf] %v692_v35  ;;  %695 = vst [vmem:[%s1262_s8 + $0x58] sm:$0xf] %v694_v36  ;;  %v698_v38 = vld [vmem:[%s1266_s9 + $0x60] sm:$0xf] }
 0x135   : >> { %697 = vst [vmem:[%s1262_s8 + $0x5c] sm:$0xf] %v696_v37  ;;  %699 = vst [vmem:[%s1262_s8 + $0x60] sm:$0xf] %v698_v38  ;;  %s1572_s14 = smov (%p701_p11, %s700_s14), 0  ;;  %s644_s12 = sadd.s32 1, %s1274_s12  }
 0x136   : >> { %s703_s15 = smul.u32 100, %s1572_s14  ;;  %p643_p12 = scmp.ge.s32.totalorder %s644_s12, %s1456_s7 }
 0x137   : >> { %s1565_s11 = smov %s1572_s14 }
 0x138   : >> { %s705_s9 = scalar_lea.vmem %s1391_s28, %s703_s15 [#allocation2]   ;;  %s706_s8 = scalar_lea.vmem %s1450_s5, %s703_s15  }
 0x139   : > { %646 = sbr.rel (!%p643_p12) target bundleno = 293 (0x125), region = 114 }
 0x13e PF: > { %1202 = sdivrem.u32 %s1570_s29, 25 }
 0x13f   : > { %s991_s17 = smul.u32 100, %s1456_s7 }
 0x141   : > { %s711_s18 = scalar_lea.vmem %s1391_s28, %s991_s17 [#allocation2]   ;;  %s713_s19 = scalar_lea.vmem %s1450_s5, %s991_s17  }
 0x147   : > { %s1203_s20 = spop.drf %1202 }
 0x148   : > { %p993_p13 = scmp.le.s32.totalorder %s1203_s20, 0 }
 0x149   : > { %s1276_s21 = smov (!%p993_p13), %s713_s19   ;;  %s1280_s22 = smov (!%p993_p13), %s711_s18  }
 0x14a   : > { %899 = sbr.rel (%p993_p13) target bundleno = 343 (0x157), region = 119  ;;  %s1284_s23 = smov (!%p993_p13), 0  }
 0x14b   : > { %s1288_s24 = smov (!%p993_p13), 0  }
 0x14f LB: >> { %v723_v39 = vld [vmem:[%s1282_s22] sm:$0xf]  ;;  %s725_s25 = sadd.s32 1, %s1286_s23  ;;  %s717_s24 = sadd.s32 1, %s1290_s24   ;;  %s1290_s24 = sphi %s1288_s24, %s717_s24   ;;  %s1286_s23 = sphi %s1284_s23, %s1285_s23   ;;  %s1282_s22 = sphi %s1280_s22, %s730_s22   ;;  %s1278_s21 = sphi %s1276_s21, %s731_s21  }
 0x150   : >> { %724 = vst [vmem:[%s1278_s21] sm:$0xf] %v723_v39  ;;  %p726_p0 = scmp.ge.s32.totalorder %s725_s25, %s1203_s20  ;;  %p716_p1 = scmp.ge.s32.totalorder %s717_s24, %s1203_s20 }
 0x152   : >> { %s1574_s25 = smov (%p726_p0, %s725_s25), 0  ;;  %719 = sbr.rel (!%p716_p1) target bundleno = 335 (0x14f), region = 125 }
 0x153   : >> { %s994_s26 = sshll.u32 %s1574_s25, 2  ;;  %s1285_s23 = smov %s1574_s25  }
 0x154   : >> { %s730_s22 = scalar_lea.vmem %s711_s18, %s994_s26 [#allocation2]   ;;  %s731_s21 = scalar_lea.vmem %s713_s19, %s994_s26  }
 0x157 PF: > { %p9_p2 = scmp.ge.s32.totalorder %s1324_s13, 4   ;;  %s1566_s9 = smov %s1254_s10 }
 0x158   : > { %s1567_s10 = smov %s1332_s16  ;;  %s1568_s11 = smov %s1324_s13 }
 0x159   :  { %11 = sbr.rel (!%p9_p2) target bundleno = 2 (0x2), region = 136 }

// kernel: encoder_forward.5
= control target key start
LH: loop header
LB: loop body
LE: loop exit
PB: predicated region body
PF: predicated region fallthrough
CT: control target
= control target key end

     0   :  { %s921_s9 = smov 0   ;;  %s923_s10 = smov 0   ;;  %s1061_s0 = inlined_call_operand.vmem [shape: bf16[98,128], index: 0, kind: input, shape index: {}]   ;;  %s1062_s1 = inlined_call_operand.vmem [shape: bf16[128,16], index: 1, kind: input, shape index: {}]   ;;  %s1063_s2 = inlined_call_operand.vmem [shape: bf16[98,16], index: 2, kind: output, shape index: {}]  }
   0x1   :  { %s925_s11 = smov 0  }
   0x2 LB: > { %s934_s12 = sadd.s32 4294967295, %s872_s11   ;;  %s936_s13 = sadd.s32 1, %s872_s11   ;;  %s872_s11 = sphi %s925_s11, %s1070_s11   ;;  %s868_s10 = sphi %s923_s10, %s1069_s10   ;;  %s864_s9 = sphi %s921_s9, %s1068_s9  }
   0x3   : > { %s63_s14 = ssub.s32 %s872_s11, %s936_s13  ;;  %s66_s15 = sadd.s32 1, %s868_s10 }
   0x4   : > { %p64_p0 = scmp.eq.s32.totalorder %s63_s14, 0  ;;  %p76_p1 = scmp.ne.s32.totalorder %s868_s10, %s864_s9 }
   0x5   : > { %p77_p2 = scmp.eq.s32.totalorder %s934_s12, 1  ;;  %p619_p3 = scmp.ge.s32.totalorder %s872_s11, 1 }
   0x6   : > { %s944_s16 = scalar_select %p64_p0, %s868_s10, %s66_s15  }
   0x7   : > { %p946_p4 = por %p77_p2, %p76_p1  ;;  %p121_p5 = scmp.lt.s32.totalorder %s872_s11, 3 }
   0x9   : > { %p122_p6 = pnand %p619_p3, %p121_p5 }
   0xa   : > { %s954_s20 = smul.u32 (!%p122_p6), 7, %s934_s12  ;;  %s143_s18 = sand.u32 (!%p122_p6), 1, %s864_s9  }
   0xb   : > { %125 = sbr.rel (%p122_p6) target bundleno = 314 (0x13a), region = 28 }
   0xc   : > { %p151_p7 = scmp.lt.s32.totalorder (!%p122_p6), %s954_s20, 12  ;;  %s712_s19 = smul.u32 (!%p122_p6), 28, %s143_s18 }
   0xe   : > { %s989_s9 = scalar_lea.vmem (!%p122_p6), [#allocation2], %s712_s19  }
  0x10   : > { %v802_v0 = vld [vmem:[%s1062_s1 + $0x38] sm:$0xff]   ;;  %v803_v1 = vld [vmem:[%s1062_s1 + $0x30] sm:$0xff]   ;;  %v804_v2 = vld [vmem:[%s1062_s1 + $0x28] sm:$0xff]   ;;  %s152_s25 = scalar_select %p151_p7, %s954_s20, 12  ;;  %vm366_vm0 = vcmask 125952  }
  0x11   : > { %672 = vmatprep.subr.bf16.mxu0 %v802_v0  ;;  %696 = vmatprep.subr.bf16.mxu1 %v802_v0  ;;  %v805_v3 = vld [vmem:[%s1062_s1 + $0x20] sm:$0xff]   ;;  %v806_v6 = vld [vmem:[%s1062_s1 + $0x18] sm:$0xff]   ;;  %v807_v7 = vld [vmem:[%s1062_s1 + $0x10] sm:$0xff]   ;;  %s382_s21 = ssub.s32 (%p946_p4), 13, %s954_s20  ;;  %s659_s22 = smul.u32 (%p946_p4), 28, %s934_s12 }
  0x12   : > { %673 = vmatpush3.bf16.msra.mxu0 %v802_v0  ;;  %704 = vmatpush3.bf16.msra.mxu1 %v802_v0  ;;  %s620_s26 = sshll.u32 %s152_s25, 2  ;;  %v808_v8 = vld [vmem:[%s1062_s1 + $0x8] sm:$0xff]   ;;  %v809_v9 = vld [vmem:[%s1062_s1] sm:$0xff]   ;;  %p383_p8 = scmp.lt.s32.totalorder (%p946_p4), %s382_s21, 7 }
  0x13   : > { %674 = vmatprep.subr.bf16.mxu0 %v803_v1  ;;  %697 = vmatprep.subr.bf16.mxu1 %v803_v1  ;;  %s970_s3 = scalar_lea.vmem %s1061_s0, %s620_s26  ;;  %s1012_s25 = scalar_lea.vmem (%p946_p4), %s1063_s2, %s659_s22  }
  0x14   : > { %v810_v4 = vld [vmem:[%s970_s3] sm:$0xff]   ;;  %v811_v5 = vld [vmem:[%s970_s3 + $0x10] sm:$0xff]   ;;  %v812_v10 = vld [vmem:[%s970_s3 + $0x8] sm:$0xff]  }
  0x15   : > { %688 = vmatprep.mubr.bf16.mxu0 %v810_v4  ;;  %692 = vmatprep.mubr.bf16.mxu1 %v811_v5  ;;  %v813_v11 = vld [vmem:[%s970_s3 + $0x18] ss:$0 sps:$4 sm:$0xff]  }
  0x16   : > { %675 = vmatpush3.bf16.msra.mxu0 %v803_v1  ;;  %705 = vmatpush3.bf16.msra.mxu1 %v803_v1 }
  0x17   : > { %676 = vmatprep.subr.bf16.mxu0 %v804_v2  ;;  %698 = vmatprep.subr.bf16.mxu1 %v804_v2 }
  0x1a   : > { %677 = vmatpush3.bf16.msra.mxu0 %v804_v2  ;;  %706 = vmatpush3.bf16.msra.mxu1 %v804_v2 }
  0x1b   : > { %678 = vmatprep.subr.bf16.mxu0 %v805_v3  ;;  %699 = vmatprep.subr.bf16.mxu1 %v805_v3 }
  0x1e   : > { %679 = vmatpush3.bf16.msra.mxu0 %v805_v3  ;;  %707 = vmatpush3.bf16.msra.mxu1 %v805_v3 }
  0x1f   : > { %680 = vmatprep.subr.bf16.mxu0 %v806_v6  ;;  %700 = vmatprep.subr.bf16.mxu1 %v806_v6 }
  0x22   : > { %681 = vmatpush3.bf16.msra.mxu0 %v806_v6  ;;  %708 = vmatpush3.bf16.msra.mxu1 %v806_v6 }
  0x23   : > { %682 = vmatprep.subr.bf16.mxu0 %v807_v7  ;;  %701 = vmatprep.subr.bf16.mxu1 %v807_v7 }
  0x26   : > { %683 = vmatpush3.bf16.msra.mxu0 %v807_v7  ;;  %709 = vmatpush3.bf16.msra.mxu1 %v807_v7 }
  0x27   : > { %684 = vmatprep.subr.bf16.mxu0 %v808_v8  ;;  %702 = vmatprep.subr.bf16.mxu1 %v808_v8 }
  0x2a   : > { %685 = vmatpush3.bf16.msra.mxu0 %v808_v8  ;;  %710 = vmatpush3.bf16.msra.mxu1 %v808_v8 }
  0x2b   : > { %686 = vmatprep.subr.bf16.mxu0 %v809_v9  ;;  %703 = vmatprep.subr.bf16.mxu1 %v809_v9 }
  0x2e   : > { %687 = vmatpush3.bf16.msra.mxu0 %v809_v9  ;;  %711 = vmatpush3.bf16.msra.mxu1 %v809_v9 }
  0x31   : > { %689 = vmatmul.mubr.bf16.vlgmr.msra.gmra.mxu0 %v812_v10  ;;  %693 = vmatmul.mubr.bf16.vlgmr.msra.gmra.mxu1 %v813_v11 }
  0xf1   : > { %v690_v12 = vpop.f32.mrf.mxu0  ;;  %v694_v13 = vpop.f32.mrf.mxu1 }
  0xf2   : > { %v325_v14 = vmul.f32 0.2, %v690_v12  ;;  %v329_v15 = vmul.f32 0.2, %v694_v13 }
  0xf3   : > { %v293_v16 = vpop.f32.mrf.mxu0  ;;  %v309_v17 = vpop.f32.mrf.mxu1 }
  0xf4   : > { %v332_v18 = vmax.f32 %v690_v12, %v325_v14  ;;  %v336_v19 = vmax.f32 %v694_v13, %v329_v15  ;;  %v323_v20 = vmul.f32 0.2, %v293_v16  ;;  %v327_v21 = vmul.f32 0.2, %v309_v17 }
  0xf5   : > { %v691_v22 = vpop.f32.mrf.mxu0  ;;  %v695_v23 = vpop.f32.mrf.mxu1 }
  0xf6   : > { %v654_v24 = vpack.c.bf16 %v332_v18, %v332_v18  ;;  %v658_v25 = vpack.c.bf16 %v336_v19, %v336_v19  ;;  %v330_v26 = vmax.f32 %v293_v16, %v323_v20  ;;  %v334_v27 = vmax.f32 %v309_v17, %v327_v21 }
  0xf7   : > { %v326_v28 = vmul.f32 0.2, %v691_v22  ;;  %v296_v29 = vpop.f32.mrf.mxu0  ;;  %v312_v30 = vpop.f32.mrf.mxu1 }
  0xf8   : > { %369 = vst.msk [vmem:[%s989_s9 + $0x8] sm:$0xf] %vm366_vm0, %v654_v24  ;;  %373 = vst.msk [vmem:[%s989_s9 + $0x18] sm:$0xf] %vm366_vm0, %v658_v25  ;;  %v652_v31 = vpack.c.bf16 %v330_v26, %v330_v26  ;;  %v656_v32 = vpack.c.bf16 %v334_v27, %v334_v27  ;;  %v324_v33 = vmul.f32 0.2, %v296_v29 }
  0xf9   : > { %v328_v34 = vmul.f32 0.2, %v312_v30  ;;  %v333_v35 = vmax.f32 %v691_v22, %v326_v28 }
  0xfa   : > { %367 = vst.msk [vmem:[%s989_s9] sm:$0xf] %vm366_vm0, %v652_v31  ;;  %371 = vst.msk [vmem:[%s989_s9 + $0x10] sm:$0xf] %vm366_vm0, %v656_v32  ;;  %v331_v36 = vmax.f32 %v296_v29, %v324_v33 }
  0xfb   : > { %v335_v37 = vmax.f32 %v312_v30, %v328_v34  ;;  %v655_v38 = vpack.c.bf16 %v333_v35, %v333_v35  ;;  %380 = sbr.rel (!%p946_p4) target bundleno = 314 (0x13a), region = 32 }
  0xfc   : > { %v653_v39 = vpack.c.bf16 %v331_v36, %v331_v36 }
  0xfd   : > { %v657_v40 = vpack.c.bf16 %v335_v37, %v335_v37  ;;  %370 = vst.msk [vmem:[%s989_s9 + $0xc] sm:$0xf] %vm366_vm0, %v655_v38 }
  0xfe   : > { %368 = vst.msk [vmem:[%s989_s9 + $0x4] sm:$0xf] %vm366_vm0, %v653_v39 }
  0xff   : > { %372 = vst.msk [vmem:[%s989_s9 + $0x14] sm:$0xf] %vm366_vm0, %v657_v40 }
 0x100   : > { %s1072_s21 = smov (!%p383_p8, %s382_s21), 7 }
 0x101   : > { %s640_s26 = sshll.u32 %s1072_s21, 6 }
 0x102   : > { %p643_p9 = scmp.eq.s32.totalorder %s640_s26, 0 }
 0x103   : > { %814 = sdivrem.u32 (!%p643_p9), %s1072_s21, 7 }
 0x104   : > { %391 = sbr.rel (%p643_p9) target bundleno = 314 (0x13a), region = 36 }
 0x10c   : > { %s1018_s17 = spop.drf %814 }
 0x10d   : > { %p644_p10 = scmp.le.s32.totalorder %s1018_s17, 0 }
 0x10e   : > { %s1065_s12 = smov (!%p644_p10), %s1012_s25  ;;  %s1066_s20 = smov (!%p644_p10), %s989_s9 }
 0x10f   : > { %572 = sbr.rel (%p644_p10) target bundleno = 289 (0x121), region = 108  ;;  %s1027_s27 = smov (!%p644_p10), 0  }
 0x110   : > { %s1029_s28 = smov (!%p644_p10), 0  }
 0x114 LB: >> { %v409_v41 = vld [vmem:[%s880_s20] sm:$0xf]  ;;  %v411_v42 = vld [vmem:[%s880_s20 + $0x4] sm:$0xf]  ;;  %v413_v43 = vld [vmem:[%s880_s20 + $0x8] sm:$0xf]  ;;  %s888_s28 = sphi %s1029_s28, %s403_s28   ;;  %s884_s27 = sphi %s1027_s27, %s1067_s27   ;;  %s880_s20 = sphi %s1066_s20, %s428_s20   ;;  %s876_s12 = sphi %s1065_s12, %s429_s12  }
 0x115   : >> { %410 = vst [vmem:[%s876_s12] sm:$0xf] %v409_v41  ;;  %412 = vst [vmem:[%s876_s12 + $0x4] sm:$0xf] %v411_v42  ;;  %v415_v44 = vld [vmem:[%s880_s20 + $0xc] sm:$0xf]  ;;  %s423_s29 = sadd.s32 1, %s884_s27 }
 0x116   : >> { %414 = vst [vmem:[%s876_s12 + $0x8] sm:$0xf] %v413_v43  ;;  %v417_v45 = vld [vmem:[%s880_s20 + $0x10] sm:$0xf]  ;;  %v419_v46 = vld [vmem:[%s880_s20 + $0x14] sm:$0xf]  ;;  %p424_p11 = scmp.ge.s32.totalorder %s423_s29, %s1018_s17 }
 0x117   : >> { %416 = vst [vmem:[%s876_s12 + $0xc] sm:$0xf] %v415_v44  ;;  %418 = vst [vmem:[%s876_s12 + $0x10] sm:$0xf] %v417_v45  ;;  %v421_v47 = vld [vmem:[%s880_s20 + $0x18] sm:$0xf] }
 0x118   : >> { %420 = vst [vmem:[%s876_s12 + $0x14] sm:$0xf] %v419_v46  ;;  %422 = vst [vmem:[%s876_s12 + $0x18] sm:$0xf] %v421_v47  ;;  %s1074_s29 = smov (%p424_p11, %s423_s29), 0  ;;  %s403_s28 = sadd.s32 1, %s888_s28  }
 0x119   : >> { %s426_s30 = smul.u32 28, %s1074_s29  ;;  %p402_p12 = scmp.ge.s32.totalorder %s403_s28, %s1018_s17 }
 0x11a   : >> { %s1067_s27 = smov %s1074_s29 }
 0x11b   : >> { %s428_s20 = scalar_lea.vmem %s989_s9, %s426_s30 [#allocation2]   ;;  %s429_s12 = scalar_lea.vmem %s1012_s25, %s426_s30  }
 0x11c   : > { %405 = sbr.rel (!%p402_p12) target bundleno = 276 (0x114), region = 114 }
 0x121 PF: > { %816 = sdivrem.u32 %s1072_s21, 7 }
 0x122   : > { %s645_s3 = smul.u32 28, %s1018_s17 }
 0x124   : > { %s434_s4 = scalar_lea.vmem %s989_s9, %s645_s3 [#allocation2]   ;;  %s436_s5 = scalar_lea.vmem %s1012_s25, %s645_s3  }
 0x12a   : > { %s817_s6 = spop.drf %816 }
 0x12b   : > { %p647_p13 = scmp.le.s32.totalorder %s817_s6, 0 }
 0x12c   : > { %s890_s7 = smov (!%p647_p13), %s436_s5   ;;  %s894_s8 = smov (!%p647_p13), %s434_s4  }
 0x12d   : > { %586 = sbr.rel (%p647_p13) target bundleno = 314 (0x13a), region = 119  ;;  %s898_s11 = smov (!%p647_p13), 0  }
 0x12e   : > { %s902_s14 = smov (!%p647_p13), 0  }
 0x132 LB: >> { %v446_v48 = vld [vmem:[%s896_s8] sm:$0xf]  ;;  %s448_s15 = sadd.s32 1, %s900_s11  ;;  %s440_s14 = sadd.s32 1, %s904_s14   ;;  %s904_s14 = sphi %s902_s14, %s440_s14   ;;  %s900_s11 = sphi %s898_s11, %s899_s11   ;;  %s896_s8 = sphi %s894_s8, %s453_s8   ;;  %s892_s7 = sphi %s890_s7, %s454_s7  }
 0x133   : >> { %447 = vst [vmem:[%s892_s7] sm:$0xf] %v446_v48  ;;  %p449_p0 = scmp.ge.s32.totalorder %s448_s15, %s817_s6  ;;  %p439_p1 = scmp.ge.s32.totalorder %s440_s14, %s817_s6 }
 0x135   : >> { %s1076_s15 = smov (%p449_p0, %s448_s15), 0  ;;  %442 = sbr.rel (!%p439_p1) target bundleno = 306 (0x132), region = 125 }
 0x136   : >> { %s648_s18 = sshll.u32 %s1076_s15, 2  ;;  %s899_s11 = smov %s1076_s15  }
 0x137   : >> { %s453_s8 = scalar_lea.vmem %s434_s4, %s648_s18 [#allocation2]   ;;  %s454_s7 = scalar_lea.vmem %s436_s5, %s648_s18  }
 0x13a PF: > { %p9_p2 = scmp.ge.s32.totalorder %s936_s13, 4   ;;  %s1068_s9 = smov %s868_s10 }
 0x13b   : > { %s1069_s10 = smov %s944_s16  ;;  %s1070_s11 = smov %s936_s13 }
 0x13c   :  { %11 = sbr.rel (!%p9_p2) target bundleno = 2 (0x2), region = 136 }

// kernel: encoder_forward.6
= control target key start
LH: loop header
LB: loop body
LE: loop exit
PB: predicated region body
PF: predicated region fallthrough
CT: control target
= control target key end

     0   :  { %s424_s9 = smov 0   ;;  %s472_s0 = inlined_call_operand.vmem [shape: bf16[32,144], index: 0, kind: input, shape index: {}]   ;;  %s473_s1 = inlined_call_operand.vmem [shape: bf16[144,32], index: 1, kind: input, shape index: {}]   ;;  %s474_s2 = inlined_call_operand.vmem [shape: bf16[32,32], index: 2, kind: output, shape index: {}]  }
   0x1 LB: > { %s350_s10 = sadd.s32 4294967295, %s406_s9   ;;  %p354_p0 = scmp.ge.s32.totalorder %s406_s9, 1  ;;  %s406_s9 = sphi %s424_s9, %s12_s9  }
   0x2   : > { %p114_p1 = scmp.lt.s32.totalorder %s406_s9, 3 }
   0x4   : > { %p115_p2 = pnand %p354_p0, %p114_p1 }
   0x5   : > { %s355_s13 = sshll.u32 (!%p115_p2), %s350_s10, 1 }
   0x6   : > { %118 = sbr.rel (%p115_p2) target bundleno = 252 (0xfc), region = 28  ;;  %p138_p3 = scmp.lt.s32.totalorder (!%p115_p2), %s355_s13, 3 }
   0xb   : > { %v388_v0 = vld [vmem:[%s473_s1 + $0x38] sm:$0xff]   ;;  %v408_v1 = vmov 0   ;;  %v389_v2 = vld [vmem:[%s473_s1 + $0x30] sm:$0xff]   ;;  %s476_s13 = smov (!%p138_p3, %s355_s13), 3  ;;  %v390_v3 = vld [vmem:[%s473_s1 + $0x28] sm:$0xff]   ;;  %vm234_vm0 = vcmask 130048  }
   0xc   : > { %238 = vmatprep.subr.bf16.mxu0 %v408_v1  ;;  %s376_s18 = sshll.u32 %s476_s13, 3  ;;  %v391_v4 = vld [vmem:[%s473_s1 + $0x20] sm:$0xff]   ;;  %v392_v6 = vld [vmem:[%s473_s1 + $0x18] sm:$0xff]   ;;  %v393_v7 = vld [vmem:[%s473_s1 + $0x10] sm:$0xff]   ;;  %s359_s6 = sshll.u32 %s476_s13, 2  ;;  %vm291_vm1 = vcmask 257024  }
   0xd   : > { %239 = vmatpush1.bf16.msra.mxu0 %v388_v0  ;;  %s142_s21 = scalar_lea.vmem %s472_s0, %s376_s18  ;;  %v394_v8 = vld [vmem:[%s473_s1 + $0x8] sm:$0xff]   ;;  %v395_v9 = vld [vmem:[%s473_s1] sm:$0xff]   ;;  %s148_s10 = scalar_lea.vmem %s474_s2, %s359_s6 }
   0xe   : > { %240 = vmatprep.subr.bf16.mxu0 %v408_v1  ;;  %v399_v5 = vld [vmem:[%s142_s21 + $0x4] ss:$8 sps:$4 sm:$0xff]   ;;  %v397_v11 = vld [vmem:[%s142_s21] ss:$8 sps:$4 sm:$0xff]  }
   0xf   : > { %371 = vmatprep.mubr.msk.bf16.mxu0 %vm234_vm0, %v399_v5  ;;  %v396_v10 = vld [vmem:[%s473_s1 + $0x40] sm:$0xff]  }
  0x11   : > { %241 = vmatpush1.bf16.msra.mxu0 %v389_v2 }
  0x12   : > { %242 = vmatprep.subr.bf16.mxu0 %v408_v1 }
  0x15   : > { %243 = vmatpush1.bf16.msra.mxu0 %v390_v3 }
  0x16   : > { %244 = vmatprep.subr.bf16.mxu0 %v408_v1 }
  0x19   : > { %245 = vmatpush1.bf16.msra.mxu0 %v391_v4 }
  0x1a   : > { %246 = vmatprep.subr.bf16.mxu0 %v408_v1 }
  0x1d   : > { %247 = vmatpush1.bf16.msra.mxu0 %v392_v6 }
  0x1e   : > { %248 = vmatprep.subr.bf16.mxu0 %v408_v1 }
  0x21   : > { %249 = vmatpush1.bf16.msra.mxu0 %v393_v7 }
  0x22   : > { %250 = vmatprep.subr.bf16.mxu0 %v408_v1 }
  0x25   : > { %251 = vmatpush1.bf16.msra.mxu0 %v394_v8 }
  0x26   : > { %252 = vmatprep.subr.bf16.mxu0 %v408_v1 }
  0x29   : > { %253 = vmatpush1.bf16.msra.mxu0 %v395_v9 }
  0x2a   : > { %268 = vmatprep.subr.bf16.mxu0 %v408_v1 }
  0x2d   : > { %269 = vmatpush2.bf16.msra.mxu0 %v396_v10 }
  0x30   : > { %271 = vmatmul.mubr.bf16.vlgmr.msra.gmra.mxu0 %v397_v11 }
  0xf0   : > { %v272_v12 = vpop.f32.mrf.mxu0 }
  0xf1   : > { %v279_v13 = vmul.f32 0.2, %v272_v12 }
  0xf2   : > { %v274_v14 = vpop.f32.mrf.mxu0 }
  0xf3   : > { %v281_v15 = vmax.f32 %v272_v12, %v279_v13 }
  0xf4   : > { %v275_v16 = vpop.f32.mrf.mxu0 }
  0xf5   : > { %v377_v17 = vpack.c.bf16 %v281_v15, %v281_v15  ;;  %v280_v18 = vmul.f32 0.2, %v275_v16 }
  0xf6   : > { %v277_v19 = vpop.f32.mrf.mxu0 }
  0xf7   : > { %292 = vst.msk [vmem:[%s148_s10] sm:$0xf] %vm291_vm1, %v377_v17  ;;  %v282_v20 = vmax.f32 %v275_v16, %v280_v18 }
  0xf9   : > { %v378_v21 = vpack.c.bf16 %v282_v20, %v282_v20 }
  0xfb   : > { %293 = vst.msk [vmem:[%s148_s10 + $0x4] sm:$0xf] %vm291_vm1, %v378_v21 }
  0xfc PF: > { %s12_s9 = sadd.s32 1, %s406_s9  }
  0xfd   : > { %p9_p4 = scmp.ge.s32.totalorder %s12_s9, 4  }
  0xff   :  { %11 = sbr.rel (!%p9_p4) target bundleno = 1 (0x1), region = 58 }

// kernel: encoder_forward.7
= control target key start
LH: loop header
LB: loop body
LE: loop exit
PB: predicated region body
PF: predicated region fallthrough
CT: control target
= control target key end

     0   :  { %v3130_v35 = vmov 1966171168   ;;  %v288_v37 = vlaneseq  ;;  %s4163_s0 = inlined_call_operand.vmem [shape: bf16[2,512], index: 0, kind: input, shape index: {}]   ;;  %s4164_s1 = inlined_call_operand.vmem [shape: bf16[512,1024], index: 1, kind: input, shape index: {}]   ;;  %s4165_s2 = inlined_call_operand.vmem [shape: bf16[1024,32], index: 2, kind: input, shape index: {}]   ;;  %s4166_s3 = inlined_call_operand.vmem [shape: f32[1,32], index: 3, kind: input, shape index: {}]   ;;  %s4167_s4 = inlined_call_operand.hbm [shape: f32[2,32], index: 4, kind: output, shape index: {}]  }
   0x1   :  { %v76_v0 = vld [vmem:[%s4164_s1 + $0x1c0] sm:$0xff]  ;;  %v286_v36 = vunpack.c.l.s4 %v3130_v35 }
   0x2   :  { %v80_v1 = vld [vmem:[%s4164_s1 + $0x1e0] sm:$0xff]  ;;  %v289_v47 = vshrl.u32 %v288_v37, 7 }
   0x3   :  { %v204_v2 = vld [vmem:[%s4164_s1 + $0x5c0] sm:$0xff]  ;;  %v2690_v3 = vcombine.high %v76_v0, %v80_v1  ;;  %v2689_v5 = vcombine.low %v76_v0, %v80_v1  ;;  %v287_v46 = vunpack.c.0.s8 %v286_v36 }
   0x4   :  { %v208_v4 = vld [vmem:[%s4164_s1 + $0x5e0] sm:$0xff] }
   0x5   :  { %v68_v6 = vld [vmem:[%s4164_s1 + $0x180] sm:$0xff]  ;;  %v2818_v8 = vcombine.high %v204_v2, %v208_v4  ;;  %v2817_v9 = vcombine.low %v204_v2, %v208_v4  ;;  %1585 = vmatprep.subr.bf16.mxu0 %v2690_v3  ;;  %v3241_v56 = vsub.s32 %v287_v46, %v289_v47 }
   0x6   :  { %v72_v7 = vld [vmem:[%s4164_s1 + $0x1a0] sm:$0xff]  ;;  %1586 = vmatpush1.bf16.msra.mxu0 %v2689_v5 }
   0x7   :  { %v2682_v10 = vcombine.high %v68_v6, %v72_v7  ;;  %v196_v11 = vld [vmem:[%s4164_s1 + $0x580] sm:$0xff]  ;;  %1626 = vmatprep.subr.bf16.mxu1 %v2818_v8  ;;  %v2681_v18 = vcombine.low %v68_v6, %v72_v7 }
   0x8   :  { %v200_v12 = vld [vmem:[%s4164_s1 + $0x5a0] sm:$0xff]  ;;  %1627 = vmatpush1.bf16.msra.mxu1 %v2817_v9 }
   0x9   :  { %v60_v13 = vld [vmem:[%s4164_s1 + $0x140] sm:$0xff]  ;;  %v2810_v14 = vcombine.high %v196_v11, %v200_v12  ;;  %1587 = vmatprep.subr.bf16.mxu0 %v2682_v10  ;;  %v2809_v19 = vcombine.low %v196_v11, %v200_v12 }
   0xa   :  { %v64_v15 = vld [vmem:[%s4164_s1 + $0x160] sm:$0xff]  ;;  %1588 = vmatpush1.bf16.msra.mxu0 %v2681_v18 }
   0xb   :  { %v188_v16 = vld [vmem:[%s4164_s1 + $0x540] sm:$0xff]  ;;  %v2674_v20 = vcombine.high %v60_v13, %v64_v15  ;;  %1628 = vmatprep.subr.bf16.mxu1 %v2810_v14  ;;  %v2673_v26 = vcombine.low %v60_v13, %v64_v15 }
   0xc   :  { %v192_v17 = vld [vmem:[%s4164_s1 + $0x560] sm:$0xff]  ;;  %1629 = vmatpush1.bf16.msra.mxu1 %v2809_v19 }
   0xd   :  { %v2802_v21 = vcombine.high %v188_v16, %v192_v17  ;;  %v52_v22 = vld [vmem:[%s4164_s1 + $0x100] sm:$0xff]  ;;  %1589 = vmatprep.subr.bf16.mxu0 %v2674_v20  ;;  %v2801_v27 = vcombine.low %v188_v16, %v192_v17 }
   0xe   :  { %v56_v23 = vld [vmem:[%s4164_s1 + $0x120] sm:$0xff]  ;;  %1590 = vmatpush1.bf16.msra.mxu0 %v2673_v26 }
   0xf   :  { %v180_v24 = vld [vmem:[%s4164_s1 + $0x500] sm:$0xff]  ;;  %v2666_v28 = vcombine.high %v52_v22, %v56_v23  ;;  %1630 = vmatprep.subr.bf16.mxu1 %v2802_v21  ;;  %v2665_v34 = vcombine.low %v52_v22, %v56_v23 }
  0x10   :  { %v184_v25 = vld [vmem:[%s4164_s1 + $0x520] sm:$0xff]  ;;  %1631 = vmatpush1.bf16.msra.mxu1 %v2801_v27 }
  0x11   :  { %v2794_v29 = vcombine.high %v180_v24, %v184_v25  ;;  %v44_v30 = vld [vmem:[%s4164_s1 + $0xc0] sm:$0xff]  ;;  %1591 = vmatprep.subr.bf16.mxu0 %v2666_v28  ;;  %v2793_v38 = vcombine.low %v180_v24, %v184_v25 }
  0x12   :  { %v48_v31 = vld [vmem:[%s4164_s1 + $0xe0] sm:$0xff]  ;;  %1592 = vmatpush1.bf16.msra.mxu0 %v2665_v34 }
  0x13   :  { %v172_v32 = vld [vmem:[%s4164_s1 + $0x4c0] sm:$0xff]  ;;  %v2658_v39 = vcombine.high %v44_v30, %v48_v31  ;;  %1632 = vmatprep.subr.bf16.mxu1 %v2794_v29  ;;  %v2657_v45 = vcombine.low %v44_v30, %v48_v31 }
  0x14   :  { %v176_v33 = vld [vmem:[%s4164_s1 + $0x4e0] sm:$0xff]  ;;  %1633 = vmatpush1.bf16.msra.mxu1 %v2793_v38 }
  0x15   :  { %v2786_v40 = vcombine.high %v172_v32, %v176_v33  ;;  %v36_v41 = vld [vmem:[%s4164_s1 + $0x80] sm:$0xff]  ;;  %1593 = vmatprep.subr.bf16.mxu0 %v2658_v39  ;;  %v2785_v48 = vcombine.low %v172_v32, %v176_v33 }
  0x16   :  { %v40_v42 = vld [vmem:[%s4164_s1 + $0xa0] sm:$0xff]  ;;  %1594 = vmatpush1.bf16.msra.mxu0 %v2657_v45 }
  0x17   :  { %v164_v43 = vld [vmem:[%s4164_s1 + $0x480] sm:$0xff]  ;;  %v2650_v49 = vcombine.high %v36_v41, %v40_v42  ;;  %1634 = vmatprep.subr.bf16.mxu1 %v2786_v40  ;;  %v2649_v55 = vcombine.low %v36_v41, %v40_v42 }
  0x18   :  { %v168_v44 = vld [vmem:[%s4164_s1 + $0x4a0] sm:$0xff]  ;;  %1635 = vmatpush1.bf16.msra.mxu1 %v2785_v48 }
  0x19   :  { %v2778_v50 = vcombine.high %v164_v43, %v168_v44  ;;  %v28_v51 = vld [vmem:[%s4164_s1 + $0x40] sm:$0xff]  ;;  %1595 = vmatprep.subr.bf16.mxu0 %v2650_v49  ;;  %v2777_v57 = vcombine.low %v164_v43, %v168_v44 }
  0x1a   :  { %v32_v52 = vld [vmem:[%s4164_s1 + $0x60] sm:$0xff]  ;;  %1596 = vmatpush1.bf16.msra.mxu0 %v2649_v55 }
  0x1b   :  { %v156_v53 = vld [vmem:[%s4164_s1 + $0x440] sm:$0xff]  ;;  %v2642_v58 = vcombine.high %v28_v51, %v32_v52  ;;  %1636 = vmatprep.subr.bf16.mxu1 %v2778_v50  ;;  %v2641_v2 = vcombine.low %v28_v51, %v32_v52 }
  0x1c   :  { %v160_v54 = vld [vmem:[%s4164_s1 + $0x460] sm:$0xff]  ;;  %1637 = vmatpush1.bf16.msra.mxu1 %v2777_v57 }
  0x1d   :  { %v3246_v59 = vld.sshfl [vmem:[%s4163_s0] sm:$0x33 pattern:$0x75316420]  ;;  %v2770_v60 = vcombine.high %v156_v53, %v160_v54  ;;  %1597 = vmatprep.subr.bf16.mxu0 %v2642_v58  ;;  %v2769_v4 = vcombine.low %v156_v53, %v160_v54 }
  0x1e   :  { %v20_v61 = vld [vmem:[%s4164_s1] sm:$0xff]  ;;  %v284_v63 = vcombine.high %v3246_v59, %v3246_v59  ;;  %1598 = vmatpush1.bf16.msra.mxu0 %v2641_v2 }
  0x1f   :  { %v24_v62 = vld [vmem:[%s4164_s1 + $0x20] sm:$0xff]  ;;  %1638 = vmatprep.subr.bf16.mxu1 %v2770_v60 }
  0x20   :  { %v148_v0 = vld [vmem:[%s4164_s1 + $0x400] sm:$0xff]  ;;  %v3263_v3 = vrot.slane %v284_v63, %v3241_v56  ;;  %v2634_v5 = vcombine.high %v20_v61, %v24_v62  ;;  %v2633_v12 = vcombine.low %v20_v61, %v24_v62  ;;  %1639 = vmatpush1.bf16.msra.mxu1 %v2769_v4 }
  0x21   :  { %v152_v1 = vld [vmem:[%s4164_s1 + $0x420] sm:$0xff] }
  0x22   :  { %v2762_v6 = vcombine.high %v148_v0, %v152_v1  ;;  %v140_v7 = vld [vmem:[%s4164_s1 + $0x3c0] sm:$0xff]  ;;  %1617 = vmatprep.mubr.bf16.mxu0 %v3263_v3  ;;  %v3274_v9 = vcombine.high %v3263_v3, %v3263_v3  ;;  %1599 = vmatprep.subr.bf16.mxu0 %v2634_v5  ;;  %v2761_v13 = vcombine.low %v148_v0, %v152_v1 }
  0x23   :  { %v144_v8 = vld [vmem:[%s4164_s1 + $0x3e0] sm:$0xff]  ;;  %1600 = vmatpush1.bf16.msra.mxu0 %v2633_v12  ;;  %v77_v12 = vld [vmem:[%s4164_s1 + $0x1c8] sm:$0xff] }
  0x24   :  { %v268_v10 = vld [vmem:[%s4164_s1 + $0x7c0] sm:$0xff]  ;;  %1658 = vmatprep.mubr.bf16.mxu1 %v3274_v9  ;;  %v2754_v14 = vcombine.high %v140_v7, %v144_v8  ;;  %1640 = vmatprep.subr.bf16.mxu1 %v2762_v6  ;;  %v2753_v20 = vcombine.low %v140_v7, %v144_v8 }
  0x25   :  { %v272_v11 = vld [vmem:[%s4164_s1 + $0x7e0] sm:$0xff]  ;;  %1641 = vmatpush1.bf16.msra.mxu1 %v2761_v13  ;;  %v81_v13 = vld [vmem:[%s4164_s1 + $0x1e8] sm:$0xff] }
  0x26   :  { %v2882_v15 = vcombine.high %v268_v10, %v272_v11  ;;  %v132_v16 = vld [vmem:[%s4164_s1 + $0x380] sm:$0xff]  ;;  %1601 = vmatprep.subr.bf16.mxu0 %v2754_v14  ;;  %v2881_v21 = vcombine.low %v268_v10, %v272_v11  ;;  %v205_v14 = vld [vmem:[%s4164_s1 + $0x5c8] sm:$0xff] }
  0x27   :  { %v136_v17 = vld [vmem:[%s4164_s1 + $0x3a0] sm:$0xff]  ;;  %1602 = vmatpush2.bf16.msra.mxu0 %v2753_v20 }
  0x28   :  { %v260_v18 = vld [vmem:[%s4164_s1 + $0x780] sm:$0xff]  ;;  %v2746_v22 = vcombine.high %v132_v16, %v136_v17  ;;  %1642 = vmatprep.subr.bf16.mxu1 %v2882_v15  ;;  %v2745_v28 = vcombine.low %v132_v16, %v136_v17  ;;  %v209_v15 = vld [vmem:[%s4164_s1 + $0x5e8] sm:$0xff]  ;;  %v3381_v17 = vrot.slane %v3246_v59, %v3241_v56 }
  0x29   :  { %v264_v19 = vld [vmem:[%s4164_s1 + $0x7a0] sm:$0xff]  ;;  %1643 = vmatpush2.bf16.msra.mxu1 %v2881_v21  ;;  %v2820_v20 = vcombine.high %v205_v14, %v209_v15  ;;  %v69_v21 = vld [vmem:[%s4164_s1 + $0x188] sm:$0xff] }
  0x2a   :  { %v2874_v23 = vcombine.high %v260_v18, %v264_v19  ;;  %v124_v24 = vld [vmem:[%s4164_s1 + $0x340] sm:$0xff]  ;;  %1603 = vmatprep.subr.bf16.mxu0 %v2746_v22  ;;  %v2873_v29 = vcombine.low %v260_v18, %v264_v19  ;;  %v2692_v19 = vcombine.high %v77_v12, %v81_v13  ;;  %v73_v22 = vld [vmem:[%s4164_s1 + $0x1a8] sm:$0xff]  ;;  %v3397_v59 = vcombine.high %v3381_v17, %v3381_v17 }
  0x2b   :  { %v128_v25 = vld [vmem:[%s4164_s1 + $0x360] sm:$0xff]  ;;  %1604 = vmatpush2.bf16.msra.mxu0 %v2745_v28  ;;  %v201_v56 = vld [vmem:[%s4164_s1 + $0x5a8] sm:$0xff] }
  0x2c   :  { %v252_v26 = vld [vmem:[%s4164_s1 + $0x740] sm:$0xff]  ;;  %v2738_v30 = vcombine.high %v124_v24, %v128_v25  ;;  %1644 = vmatprep.subr.bf16.mxu1 %v2874_v23  ;;  %v2737_v36 = vcombine.low %v124_v24, %v128_v25  ;;  %v197_v23 = vld [vmem:[%s4164_s1 + $0x588] sm:$0xff]  ;;  %v2691_v24 = vcombine.low %v77_v12, %v81_v13  ;;  %v2819_v25 = vcombine.low %v205_v14, %v209_v15 }
  0x2d   :  { %v256_v27 = vld [vmem:[%s4164_s1 + $0x760] sm:$0xff]  ;;  %1645 = vmatpush2.bf16.msra.mxu1 %v2873_v29  ;;  %v65_v28 = vld [vmem:[%s4164_s1 + $0x168] sm:$0xff] }
  0x2e   :  { %v2866_v31 = vcombine.high %v252_v26, %v256_v27  ;;  %v116_v32 = vld [vmem:[%s4164_s1 + $0x300] sm:$0xff]  ;;  %1605 = vmatprep.subr.bf16.mxu0 %v2738_v30  ;;  %v2865_v37 = vcombine.low %v252_v26, %v256_v27  ;;  %v2684_v26 = vcombine.high %v69_v21, %v73_v22  ;;  %v61_v27 = vld [vmem:[%s4164_s1 + $0x148] sm:$0xff]  ;;  %v2812_v30 = vcombine.high %v197_v23, %v201_v56 }
  0x2f   :  { %v120_v33 = vld [vmem:[%s4164_s1 + $0x320] sm:$0xff]  ;;  %1606 = vmatpush2.bf16.msra.mxu0 %v2737_v36  ;;  %v189_v29 = vld [vmem:[%s4164_s1 + $0x548] sm:$0xff] }
  0x30   :  { %v244_v34 = vld [vmem:[%s4164_s1 + $0x700] sm:$0xff]  ;;  %v2730_v38 = vcombine.high %v116_v32, %v120_v33  ;;  %1646 = vmatprep.subr.bf16.mxu1 %v2866_v31  ;;  %v2729_v44 = vcombine.low %v116_v32, %v120_v33  ;;  %v193_v31 = vld [vmem:[%s4164_s1 + $0x568] sm:$0xff]  ;;  %v2683_v32 = vcombine.low %v69_v21, %v73_v22  ;;  %v2811_v33 = vcombine.low %v197_v23, %v201_v56 }
  0x31   :  { %v248_v35 = vld [vmem:[%s4164_s1 + $0x720] sm:$0xff]  ;;  %1647 = vmatpush2.bf16.msra.mxu1 %v2865_v37  ;;  %v57_v36 = vld [vmem:[%s4164_s1 + $0x128] sm:$0xff] }
  0x32   :  { %v2858_v39 = vcombine.high %v244_v34, %v248_v35  ;;  %v108_v40 = vld [vmem:[%s4164_s1 + $0x2c0] sm:$0xff]  ;;  %1607 = vmatprep.subr.bf16.mxu0 %v2730_v38  ;;  %v2857_v45 = vcombine.low %v244_v34, %v248_v35  ;;  %v2676_v34 = vcombine.high %v61_v27, %v65_v28  ;;  %v53_v35 = vld [vmem:[%s4164_s1 + $0x108] sm:$0xff]  ;;  %v2804_v38 = vcombine.high %v189_v29, %v193_v31 }
  0x33   :  { %v112_v41 = vld [vmem:[%s4164_s1 + $0x2e0] sm:$0xff]  ;;  %1608 = vmatpush2.bf16.msra.mxu0 %v2729_v44  ;;  %v181_v37 = vld [vmem:[%s4164_s1 + $0x508] sm:$0xff] }
  0x34   :  { %v236_v42 = vld [vmem:[%s4164_s1 + $0x6c0] sm:$0xff]  ;;  %v2722_v46 = vcombine.high %v108_v40, %v112_v41  ;;  %1648 = vmatprep.subr.bf16.mxu1 %v2858_v39  ;;  %v2721_v52 = vcombine.low %v108_v40, %v112_v41  ;;  %v185_v39 = vld [vmem:[%s4164_s1 + $0x528] sm:$0xff]  ;;  %v2675_v40 = vcombine.low %v61_v27, %v65_v28  ;;  %v2803_v41 = vcombine.low %v189_v29, %v193_v31 }
  0x35   :  { %v240_v43 = vld [vmem:[%s4164_s1 + $0x6e0] sm:$0xff]  ;;  %1649 = vmatpush2.bf16.msra.mxu1 %v2857_v45  ;;  %v49_v44 = vld [vmem:[%s4164_s1 + $0xe8] sm:$0xff] }
  0x36   :  { %v2850_v47 = vcombine.high %v236_v42, %v240_v43  ;;  %v100_v48 = vld [vmem:[%s4164_s1 + $0x280] sm:$0xff]  ;;  %1609 = vmatprep.subr.bf16.mxu0 %v2722_v46  ;;  %v2849_v53 = vcombine.low %v236_v42, %v240_v43  ;;  %v2668_v42 = vcombine.high %v53_v35, %v57_v36  ;;  %v45_v43 = vld [vmem:[%s4164_s1 + $0xc8] sm:$0xff]  ;;  %v2796_v46 = vcombine.high %v181_v37, %v185_v39 }
  0x37   :  { %v104_v49 = vld [vmem:[%s4164_s1 + $0x2a0] sm:$0xff]  ;;  %1610 = vmatpush2.bf16.msra.mxu0 %v2721_v52  ;;  %v173_v45 = vld [vmem:[%s4164_s1 + $0x4c8] sm:$0xff] }
  0x38   :  { %v228_v50 = vld [vmem:[%s4164_s1 + $0x680] sm:$0xff]  ;;  %v2714_v54 = vcombine.high %v100_v48, %v104_v49  ;;  %1650 = vmatprep.subr.bf16.mxu1 %v2850_v47  ;;  %v2713_v62 = vcombine.low %v100_v48, %v104_v49  ;;  %v177_v47 = vld [vmem:[%s4164_s1 + $0x4e8] sm:$0xff]  ;;  %v2667_v48 = vcombine.low %v53_v35, %v57_v36  ;;  %v2795_v49 = vcombine.low %v181_v37, %v185_v39 }
  0x39   :  { %v232_v51 = vld [vmem:[%s4164_s1 + $0x6a0] sm:$0xff]  ;;  %1651 = vmatpush2.bf16.msra.mxu1 %v2849_v53  ;;  %v41_v52 = vld [vmem:[%s4164_s1 + $0xa8] sm:$0xff] }
  0x3a   :  { %v2842_v55 = vcombine.high %v228_v50, %v232_v51  ;;  %v92_v57 = vld [vmem:[%s4164_s1 + $0x240] sm:$0xff]  ;;  %1611 = vmatprep.subr.bf16.mxu0 %v2714_v54  ;;  %v2841_v63 = vcombine.low %v228_v50, %v232_v51  ;;  %v2660_v50 = vcombine.high %v45_v43, %v49_v44  ;;  %v37_v51 = vld [vmem:[%s4164_s1 + $0x88] sm:$0xff]  ;;  %v2788_v54 = vcombine.high %v173_v45, %v177_v47 }
  0x3b   :  { %v96_v58 = vld [vmem:[%s4164_s1 + $0x260] sm:$0xff]  ;;  %1612 = vmatpush2.bf16.msra.mxu0 %v2713_v62  ;;  %v165_v53 = vld [vmem:[%s4164_s1 + $0x488] sm:$0xff] }
  0x3c   :  { %v220_v60 = vld [vmem:[%s4164_s1 + $0x640] sm:$0xff]  ;;  %v2706_v0 = vcombine.high %v92_v57, %v96_v58  ;;  %1652 = vmatprep.subr.bf16.mxu1 %v2842_v55  ;;  %v2705_v7 = vcombine.low %v92_v57, %v96_v58  ;;  %v169_v55 = vld [vmem:[%s4164_s1 + $0x4a8] sm:$0xff]  ;;  %v2659_v57 = vcombine.low %v45_v43, %v49_v44  ;;  %v2787_v58 = vcombine.low %v173_v45, %v177_v47 }
  0x3d   :  { %v224_v61 = vld [vmem:[%s4164_s1 + $0x660] sm:$0xff]  ;;  %1653 = vmatpush2.bf16.msra.mxu1 %v2841_v63  ;;  %v33_v62 = vld [vmem:[%s4164_s1 + $0x68] sm:$0xff] }
  0x3e   :  { %v2834_v1 = vcombine.high %v220_v60, %v224_v61  ;;  %v84_v2 = vld [vmem:[%s4164_s1 + $0x200] sm:$0xff]  ;;  %1613 = vmatprep.subr.bf16.mxu0 %v2706_v0  ;;  %v2833_v8 = vcombine.low %v220_v60, %v224_v61  ;;  %v2652_v60 = vcombine.high %v37_v51, %v41_v52  ;;  %v29_v61 = vld [vmem:[%s4164_s1 + $0x48] sm:$0xff]  ;;  %v2780_v0 = vcombine.high %v165_v53, %v169_v55 }
  0x3f   :  { %v88_v4 = vld [vmem:[%s4164_s1 + $0x220] sm:$0xff]  ;;  %1614 = vmatpush2.bf16.msra.mxu0 %v2705_v7  ;;  %v157_v63 = vld [vmem:[%s4164_s1 + $0x448] sm:$0xff]  ;;  %v2643_v12 = vcombine.low %v29_v61, %v33_v62 }
  0x40   :  { %v212_v5 = vld [vmem:[%s4164_s1 + $0x600] sm:$0xff]  ;;  %v2698_v10 = vcombine.high %v84_v2, %v88_v4  ;;  %1654 = vmatprep.subr.bf16.mxu1 %v2834_v1  ;;  %v2697_v16 = vcombine.low %v84_v2, %v88_v4  ;;  %v161_v1 = vld [vmem:[%s4164_s1 + $0x468] sm:$0xff]  ;;  %v2651_v2 = vcombine.low %v37_v51, %v41_v52  ;;  %v2779_v4 = vcombine.low %v165_v53, %v169_v55 }
  0x41   :  { %v216_v6 = vld [vmem:[%s4164_s1 + $0x620] sm:$0xff]  ;;  %1655 = vmatpush2.bf16.msra.mxu1 %v2833_v8  ;;  %v25_v7 = vld [vmem:[%s4164_s1 + $0x28] sm:$0xff]  ;;  %v2771_v13 = vcombine.low %v157_v63, %v161_v1 }
  0x42   :  { %v2826_v11 = vcombine.high %v212_v5, %v216_v6  ;;  %1615 = vmatprep.subr.bf16.mxu0 %v2698_v10  ;;  %v2825_v18 = vcombine.low %v212_v5, %v216_v6  ;;  %v2644_v5 = vcombine.high %v29_v61, %v33_v62  ;;  %v21_v6 = vld [vmem:[%s4164_s1 + $0x8] sm:$0xff]  ;;  %v2772_v10 = vcombine.high %v157_v63, %v161_v1 }
  0x43   :  { %1616 = vmatpush2.bf16.msra.mxu0 %v2697_v16  ;;  %v149_v8 = vld [vmem:[%s4164_s1 + $0x408] sm:$0xff]  ;;  %v2636_v14 = vcombine.high %v21_v6, %v25_v7  ;;  %v2635_v21 = vcombine.low %v21_v6, %v25_v7 }
  0x44   :  { %1656 = vmatprep.subr.bf16.mxu1 %v2826_v11  ;;  %1667 = vmatprep.subr.bf16.mxu0 %v2692_v19  ;;  %v153_v11 = vld [vmem:[%s4164_s1 + $0x428] sm:$0xff] }
  0x45   :  { %1657 = vmatpush2.bf16.msra.mxu1 %v2825_v18  ;;  %v141_v15 = vld [vmem:[%s4164_s1 + $0x3c8] sm:$0xff]  ;;  %v2764_v19 = vcombine.high %v149_v8, %v153_v11  ;;  %v2763_v22 = vcombine.low %v149_v8, %v153_v11 }
  0x46   :  { %1708 = vmatprep.subr.bf16.mxu1 %v2820_v20  ;;  %1618 = vmatmul.mubr.bf16.vlgmr.msra.gmra.mxu0 %v3381_v17  ;;  %v145_v16 = vld [vmem:[%s4164_s1 + $0x3e8] sm:$0xff] }
  0x47   :  { %1668 = vmatpush1.bf16.msra.mxu0 %v2691_v24  ;;  %1699 = vmatprep.mubr.bf16.mxu0 %v3263_v3  ;;  %v269_v18 = vld [vmem:[%s4164_s1 + $0x7c8] sm:$0xff]  ;;  %v2756_v23 = vcombine.high %v141_v15, %v145_v16  ;;  %v2755_v28 = vcombine.low %v141_v15, %v145_v16 }
  0x48   :  { %1659 = vmatmul.mubr.bf16.vlgmr.msra.gmra.mxu1 %v3397_v59  ;;  %1669 = vmatprep.subr.bf16.mxu0 %v2684_v26  ;;  %v273_v20 = vld [vmem:[%s4164_s1 + $0x7e8] sm:$0xff] }
  0x49   :  { %1709 = vmatpush1.bf16.msra.mxu1 %v2819_v25  ;;  %1740 = vmatprep.mubr.bf16.mxu1 %v3274_v9  ;;  %v133_v56 = vld [vmem:[%s4164_s1 + $0x388] sm:$0xff]  ;;  %v2884_v26 = vcombine.high %v269_v18, %v273_v20  ;;  %v2883_v29 = vcombine.low %v269_v18, %v273_v20  ;;  %v78_v20 = vld [vmem:[%s4164_s1 + $0x1d0] sm:$0xff] }
  0x4a   :  { %1710 = vmatprep.subr.bf16.mxu1 %v2812_v30  ;;  %v137_v24 = vld [vmem:[%s4164_s1 + $0x3a8] sm:$0xff] }
  0x4b   :  { %1670 = vmatpush1.bf16.msra.mxu0 %v2683_v32  ;;  %v261_v25 = vld [vmem:[%s4164_s1 + $0x788] sm:$0xff]  ;;  %v2748_v30 = vcombine.high %v133_v56, %v137_v24  ;;  %v2747_v36 = vcombine.low %v133_v56, %v137_v24  ;;  %v210_v56 = vld [vmem:[%s4164_s1 + $0x5f0] sm:$0xff] }
  0x4c   :  { %1671 = vmatprep.subr.bf16.mxu0 %v2676_v34  ;;  %v265_v27 = vld [vmem:[%s4164_s1 + $0x7a8] sm:$0xff] }
  0x4d   :  { %1711 = vmatpush1.bf16.msra.mxu1 %v2811_v33  ;;  %v125_v31 = vld [vmem:[%s4164_s1 + $0x348] sm:$0xff]  ;;  %v2876_v34 = vcombine.high %v261_v25, %v265_v27  ;;  %v2875_v37 = vcombine.low %v261_v25, %v265_v27  ;;  %v70_v27 = vld [vmem:[%s4164_s1 + $0x190] sm:$0xff] }
  0x4e   :  { %1712 = vmatprep.subr.bf16.mxu1 %v2804_v38  ;;  %v129_v32 = vld [vmem:[%s4164_s1 + $0x368] sm:$0xff] }
  0x4f   :  { %1672 = vmatpush1.bf16.msra.mxu0 %v2675_v40  ;;  %v253_v33 = vld [vmem:[%s4164_s1 + $0x748] sm:$0xff]  ;;  %v2740_v38 = vcombine.high %v125_v31, %v129_v32  ;;  %v2739_v44 = vcombine.low %v125_v31, %v129_v32  ;;  %v202_v31 = vld [vmem:[%s4164_s1 + $0x5b0] sm:$0xff] }
  0x50   :  { %1673 = vmatprep.subr.bf16.mxu0 %v2668_v42  ;;  %v257_v35 = vld [vmem:[%s4164_s1 + $0x768] sm:$0xff] }
  0x51   :  { %1713 = vmatpush1.bf16.msra.mxu1 %v2803_v41  ;;  %v117_v39 = vld [vmem:[%s4164_s1 + $0x308] sm:$0xff]  ;;  %v2868_v42 = vcombine.high %v253_v33, %v257_v35  ;;  %v2867_v45 = vcombine.low %v253_v33, %v257_v35 }
  0x52   :  { %1714 = vmatprep.subr.bf16.mxu1 %v2796_v46  ;;  %v121_v40 = vld [vmem:[%s4164_s1 + $0x328] sm:$0xff] }
  0x53   :  { %1674 = vmatpush1.bf16.msra.mxu0 %v2667_v48  ;;  %v245_v41 = vld [vmem:[%s4164_s1 + $0x708] sm:$0xff]  ;;  %v2732_v46 = vcombine.high %v117_v39, %v121_v40  ;;  %v2731_v52 = vcombine.low %v117_v39, %v121_v40 }
  0x54   :  { %1675 = vmatprep.subr.bf16.mxu0 %v2660_v50  ;;  %v249_v43 = vld [vmem:[%s4164_s1 + $0x728] sm:$0xff] }
  0x55   :  { %1715 = vmatpush1.bf16.msra.mxu1 %v2795_v49  ;;  %v109_v47 = vld [vmem:[%s4164_s1 + $0x2c8] sm:$0xff]  ;;  %v2860_v50 = vcombine.high %v245_v41, %v249_v43  ;;  %v2859_v53 = vcombine.low %v245_v41, %v249_v43 }
  0x56   :  { %1716 = vmatprep.subr.bf16.mxu1 %v2788_v54  ;;  %v113_v48 = vld [vmem:[%s4164_s1 + $0x2e8] sm:$0xff] }
  0x57   :  { %1676 = vmatpush1.bf16.msra.mxu0 %v2659_v57  ;;  %v237_v49 = vld [vmem:[%s4164_s1 + $0x6c8] sm:$0xff]  ;;  %v2724_v54 = vcombine.high %v109_v47, %v113_v48  ;;  %v2723_v62 = vcombine.low %v109_v47, %v113_v48 }
  0x58   :  { %1677 = vmatprep.subr.bf16.mxu0 %v2652_v60  ;;  %v241_v51 = vld [vmem:[%s4164_s1 + $0x6e8] sm:$0xff] }
  0x59   :  { %1717 = vmatpush1.bf16.msra.mxu1 %v2787_v58  ;;  %v101_v55 = vld [vmem:[%s4164_s1 + $0x288] sm:$0xff]  ;;  %v2852_v60 = vcombine.high %v237_v49, %v241_v51  ;;  %v2851_v63 = vcombine.low %v237_v49, %v241_v51 }
  0x5a   :  { %1718 = vmatprep.subr.bf16.mxu1 %v2780_v0  ;;  %v105_v57 = vld [vmem:[%s4164_s1 + $0x2a8] sm:$0xff] }
  0x5b   :  { %1678 = vmatpush1.bf16.msra.mxu0 %v2651_v2  ;;  %v229_v58 = vld [vmem:[%s4164_s1 + $0x688] sm:$0xff]  ;;  %v2716_v0 = vcombine.high %v101_v55, %v105_v57  ;;  %v2715_v7 = vcombine.low %v101_v55, %v105_v57 }
  0x5c   :  { %1679 = vmatprep.subr.bf16.mxu0 %v2644_v5  ;;  %v233_v61 = vld [vmem:[%s4164_s1 + $0x6a8] sm:$0xff] }
  0x5d   :  { %1719 = vmatpush1.bf16.msra.mxu1 %v2779_v4  ;;  %v93_v1 = vld [vmem:[%s4164_s1 + $0x248] sm:$0xff]  ;;  %v2844_v5 = vcombine.high %v229_v58, %v233_v61  ;;  %v2843_v8 = vcombine.low %v229_v58, %v233_v61 }
  0x5e   :  { %1720 = vmatprep.subr.bf16.mxu1 %v2772_v10  ;;  %v97_v2 = vld [vmem:[%s4164_s1 + $0x268] sm:$0xff] }
  0x5f   :  { %1680 = vmatpush1.bf16.msra.mxu0 %v2643_v12  ;;  %v221_v4 = vld [vmem:[%s4164_s1 + $0x648] sm:$0xff]  ;;  %v2708_v10 = vcombine.high %v93_v1, %v97_v2  ;;  %v2707_v16 = vcombine.low %v93_v1, %v97_v2 }
  0x60   :  { %1681 = vmatprep.subr.bf16.mxu0 %v2636_v14  ;;  %v225_v6 = vld [vmem:[%s4164_s1 + $0x668] sm:$0xff] }
  0x61   :  { %1721 = vmatpush1.bf16.msra.mxu1 %v2771_v13  ;;  %v85_v11 = vld [vmem:[%s4164_s1 + $0x208] sm:$0xff]  ;;  %v2836_v14 = vcombine.high %v221_v4, %v225_v6  ;;  %v2835_v18 = vcombine.low %v221_v4, %v225_v6 }
  0x62   :  { %1722 = vmatprep.subr.bf16.mxu1 %v2764_v19  ;;  %v89_v12 = vld [vmem:[%s4164_s1 + $0x228] sm:$0xff] }
  0x63   :  { %1682 = vmatpush1.bf16.msra.mxu0 %v2635_v21  ;;  %v213_v13 = vld [vmem:[%s4164_s1 + $0x608] sm:$0xff]  ;;  %v2700_v19 = vcombine.high %v85_v11, %v89_v12  ;;  %v82_v21 = vld [vmem:[%s4164_s1 + $0x1f0] sm:$0xff]  ;;  %v2699_v24 = vcombine.low %v85_v11, %v89_v12 }
  0x64   :  { %1683 = vmatprep.subr.bf16.mxu0 %v2756_v23  ;;  %v217_v15 = vld [vmem:[%s4164_s1 + $0x628] sm:$0xff]  ;;  %v2693_v32 = vcombine.low %v78_v20, %v82_v21 }
  0x65   :  { %1723 = vmatpush1.bf16.msra.mxu1 %v2763_v22  ;;  %v206_v22 = vld [vmem:[%s4164_s1 + $0x5d0] sm:$0xff]  ;;  %v2828_v23 = vcombine.high %v213_v13, %v217_v15  ;;  %v2827_v25 = vcombine.low %v213_v13, %v217_v15 }
  0x66   :  { %1724 = vmatprep.subr.bf16.mxu1 %v2884_v26  ;;  %v2694_v26 = vcombine.high %v78_v20, %v82_v21 }
  0x67   :  { %1684 = vmatpush2.bf16.msra.mxu0 %v2755_v28  ;;  %v74_v28 = vld [vmem:[%s4164_s1 + $0x1b0] sm:$0xff] }
  0x68   :  { %1685 = vmatprep.subr.bf16.mxu0 %v2748_v30  ;;  %v2822_v30 = vcombine.high %v206_v22, %v210_v56 }
  0x69   :  { %1725 = vmatpush2.bf16.msra.mxu1 %v2883_v29  ;;  %v198_v29 = vld [vmem:[%s4164_s1 + $0x590] sm:$0xff] }
  0x6a   :  { %1726 = vmatprep.subr.bf16.mxu1 %v2876_v34 }
  0x6b   :  { %1686 = vmatpush2.bf16.msra.mxu0 %v2747_v36 }
  0x6c   :  { %1687 = vmatprep.subr.bf16.mxu0 %v2740_v38 }
  0x6d   :  { %1727 = vmatpush2.bf16.msra.mxu1 %v2875_v37 }
  0x6e   :  { %1728 = vmatprep.subr.bf16.mxu1 %v2868_v42 }
  0x6f   :  { %1688 = vmatpush2.bf16.msra.mxu0 %v2739_v44 }
  0x70   :  { %1689 = vmatprep.subr.bf16.mxu0 %v2732_v46 }
  0x71   :  { %1729 = vmatpush2.bf16.msra.mxu1 %v2867_v45 }
  0x72   :  { %1730 = vmatprep.subr.bf16.mxu1 %v2860_v50 }
  0x73   :  { %1690 = vmatpush2.bf16.msra.mxu0 %v2731_v52 }
  0x74   :  { %1691 = vmatprep.subr.bf16.mxu0 %v2724_v54 }
  0x75   :  { %1731 = vmatpush2.bf16.msra.mxu1 %v2859_v53 }
  0x76   :  { %1732 = vmatprep.subr.bf16.mxu1 %v2852_v60 }
  0x77   :  { %1692 = vmatpush2.bf16.msra.mxu0 %v2723_v62 }
  0x78   :  { %1693 = vmatprep.subr.bf16.mxu0 %v2716_v0 }
  0x79   :  { %1733 = vmatpush2.bf16.msra.mxu1 %v2851_v63 }
  0x7a   :  { %1734 = vmatprep.subr.bf16.mxu1 %v2844_v5 }
  0x7b   :  { %1694 = vmatpush2.bf16.msra.mxu0 %v2715_v7 }
  0x7c   :  { %1695 = vmatprep.subr.bf16.mxu0 %v2708_v10 }
  0x7d   :  { %1735 = vmatpush2.bf16.msra.mxu1 %v2843_v8 }
  0x7e   :  { %1736 = vmatprep.subr.bf16.mxu1 %v2836_v14 }
  0x7f   :  { %1696 = vmatpush2.bf16.msra.mxu0 %v2707_v16 }
  0x80   :  { %1697 = vmatprep.subr.bf16.mxu0 %v2700_v19 }
  0x81   :  { %1737 = vmatpush2.bf16.msra.mxu1 %v2835_v18 }
  0x82   :  { %1738 = vmatprep.subr.bf16.mxu1 %v2828_v23 }
  0x83   :  { %1698 = vmatpush2.bf16.msra.mxu0 %v2699_v24 }
  0x84   :  { %9 = vsyncpa [#allocation3], 0  ;;  %1749 = vmatprep.subr.bf16.mxu0 %v2694_v26  ;;  %v2821_v33 = vcombine.low %v206_v22, %v210_v56  ;;  %v2686_v34 = vcombine.high %v70_v27, %v74_v28  ;;  %v2814_v35 = vcombine.high %v198_v29, %v202_v31  ;;  %v62_v36 = vld [vmem:[%s4164_s1 + $0x150] sm:$0xff]  ;;  %v2685_v40 = vcombine.low %v70_v27, %v74_v28  ;;  %s3131_s7 = smov [#allocation2]  }
  0x85   :  { %1739 = vmatpush2.bf16.msra.mxu1 %v2827_v25  ;;  %v66_v37 = vld [vmem:[%s4164_s1 + $0x170] sm:$0xff]  ;;  %v2813_v41 = vcombine.low %v198_v29, %v202_v31  ;;  %s2624_s8 = sshll.u32 %s3131_s7, 4  ;;  %vm2616_vm0 = vcmask 254976   ;;  %s2625_s8 = int_to_ptr.vmem [resolvable:$true] %s2624_s8 }
  0x86   :  { %1790 = vmatprep.subr.bf16.mxu1 %v2822_v30  ;;  %1700 = vmatmul.mubr.bf16.vlgmr.msra.gmra.mxu0 %v3381_v17  ;;  %v190_v38 = vld [vmem:[%s4164_s1 + $0x550] sm:$0xff]  ;;  %v2678_v42 = vcombine.high %v62_v36, %v66_v37  ;;  %v2677_v48 = vcombine.low %v62_v36, %v66_v37  ;;  %p3113_p1 = scmp.lt.s32.totalorder %s2625_s8, %s2625_s8 }
  0x87   :  { %v194_v39 = vld [vmem:[%s4164_s1 + $0x570] sm:$0xff]  ;;  %1750 = vmatpush1.bf16.msra.mxu0 %v2693_v32  ;;  %1781 = vmatprep.mubr.bf16.mxu0 %v3263_v3 }
  0x88   :  { %1741 = vmatmul.mubr.bf16.vlgmr.msra.gmra.mxu1 %v3397_v59  ;;  %1751 = vmatprep.subr.bf16.mxu0 %v2686_v34  ;;  %v2806_v43 = vcombine.high %v190_v38, %v194_v39  ;;  %v54_v44 = vld [vmem:[%s4164_s1 + $0x110] sm:$0xff]  ;;  %v2805_v49 = vcombine.low %v190_v38, %v194_v39 }
  0x89   :  { %1791 = vmatpush1.bf16.msra.mxu1 %v2821_v33  ;;  %v58_v45 = vld [vmem:[%s4164_s1 + $0x130] sm:$0xff]  ;;  %1822 = vmatprep.mubr.bf16.mxu1 %v3274_v9 }
  0x8a   :  { %1792 = vmatprep.subr.bf16.mxu1 %v2814_v35  ;;  %v182_v46 = vld [vmem:[%s4164_s1 + $0x510] sm:$0xff]  ;;  %v2670_v50 = vcombine.high %v54_v44, %v58_v45  ;;  %v2669_v57 = vcombine.low %v54_v44, %v58_v45 }
  0x8b   :  { %v186_v47 = vld [vmem:[%s4164_s1 + $0x530] sm:$0xff]  ;;  %1752 = vmatpush1.bf16.msra.mxu0 %v2685_v40 }
  0x8c   :  { %1753 = vmatprep.subr.bf16.mxu0 %v2678_v42  ;;  %v2798_v51 = vcombine.high %v182_v46, %v186_v47  ;;  %v46_v52 = vld [vmem:[%s4164_s1 + $0xd0] sm:$0xff]  ;;  %v2797_v58 = vcombine.low %v182_v46, %v186_v47 }
  0x8d   :  { %1793 = vmatpush1.bf16.msra.mxu1 %v2813_v41  ;;  %v50_v53 = vld [vmem:[%s4164_s1 + $0xf0] sm:$0xff] }
  0x8e   :  { %1794 = vmatprep.subr.bf16.mxu1 %v2806_v43  ;;  %v174_v54 = vld [vmem:[%s4164_s1 + $0x4d0] sm:$0xff]  ;;  %v2662_v60 = vcombine.high %v46_v52, %v50_v53  ;;  %v2661_v2 = vcombine.low %v46_v52, %v50_v53 }
  0x8f   :  { %v178_v55 = vld [vmem:[%s4164_s1 + $0x4f0] sm:$0xff]  ;;  %1754 = vmatpush1.bf16.msra.mxu0 %v2677_v48 }
  0x90   :  { %1755 = vmatprep.subr.bf16.mxu0 %v2670_v50  ;;  %v2790_v61 = vcombine.high %v174_v54, %v178_v55  ;;  %v38_v62 = vld [vmem:[%s4164_s1 + $0x90] sm:$0xff]  ;;  %v2789_v4 = vcombine.low %v174_v54, %v178_v55 }
  0x91   :  { %1795 = vmatpush1.bf16.msra.mxu1 %v2805_v49  ;;  %v42_v63 = vld [vmem:[%s4164_s1 + $0xb0] sm:$0xff] }
  0x92   :  { %1796 = vmatprep.subr.bf16.mxu1 %v2798_v51  ;;  %v166_v0 = vld [vmem:[%s4164_s1 + $0x490] sm:$0xff]  ;;  %v2654_v5 = vcombine.high %v38_v62, %v42_v63  ;;  %v2653_v12 = vcombine.low %v38_v62, %v42_v63 }
  0x93   :  { %v170_v1 = vld [vmem:[%s4164_s1 + $0x4b0] sm:$0xff]  ;;  %1756 = vmatpush1.bf16.msra.mxu0 %v2669_v57 }
  0x94   :  { %1757 = vmatprep.subr.bf16.mxu0 %v2662_v60  ;;  %v2782_v6 = vcombine.high %v166_v0, %v170_v1  ;;  %v30_v7 = vld [vmem:[%s4164_s1 + $0x50] sm:$0xff]  ;;  %v2781_v13 = vcombine.low %v166_v0, %v170_v1 }
  0x95   :  { %1797 = vmatpush1.bf16.msra.mxu1 %v2797_v58  ;;  %v34_v8 = vld [vmem:[%s4164_s1 + $0x70] sm:$0xff] }
  0x96   :  { %1798 = vmatprep.subr.bf16.mxu1 %v2790_v61  ;;  %v158_v10 = vld [vmem:[%s4164_s1 + $0x450] sm:$0xff]  ;;  %v2646_v14 = vcombine.high %v30_v7, %v34_v8  ;;  %v2645_v21 = vcombine.low %v30_v7, %v34_v8 }
  0x97   :  { %v162_v11 = vld [vmem:[%s4164_s1 + $0x470] sm:$0xff]  ;;  %1758 = vmatpush1.bf16.msra.mxu0 %v2661_v2 }
  0x98   :  { %1759 = vmatprep.subr.bf16.mxu0 %v2654_v5  ;;  %v2774_v15 = vcombine.high %v158_v10, %v162_v11  ;;  %v22_v16 = vld [vmem:[%s4164_s1 + $0x10] sm:$0xff]  ;;  %v2773_v22 = vcombine.low %v158_v10, %v162_v11 }
  0x99   :  { %1799 = vmatpush1.bf16.msra.mxu1 %v2789_v4  ;;  %v26_v18 = vld [vmem:[%s4164_s1 + $0x30] sm:$0xff] }
  0x9a   :  { %1800 = vmatprep.subr.bf16.mxu1 %v2782_v6  ;;  %v150_v19 = vld [vmem:[%s4164_s1 + $0x410] sm:$0xff]  ;;  %v2638_v23 = vcombine.high %v22_v16, %v26_v18  ;;  %v2637_v28 = vcombine.low %v22_v16, %v26_v18 }
  0x9b   :  { %v154_v20 = vld [vmem:[%s4164_s1 + $0x430] sm:$0xff]  ;;  %1760 = vmatpush1.bf16.msra.mxu0 %v2653_v12 }
  0x9c   :  { %1761 = vmatprep.subr.bf16.mxu0 %v2646_v14  ;;  %v2766_v56 = vcombine.high %v150_v19, %v154_v20  ;;  %v142_v24 = vld [vmem:[%s4164_s1 + $0x3d0] sm:$0xff]  ;;  %v2765_v29 = vcombine.low %v150_v19, %v154_v20 }
  0x9d   :  { %1801 = vmatpush1.bf16.msra.mxu1 %v2781_v13  ;;  %v146_v25 = vld [vmem:[%s4164_s1 + $0x3f0] sm:$0xff] }
  0x9e   :  { %1802 = vmatprep.subr.bf16.mxu1 %v2774_v15  ;;  %v270_v26 = vld [vmem:[%s4164_s1 + $0x7d0] sm:$0xff]  ;;  %v2758_v30 = vcombine.high %v142_v24, %v146_v25  ;;  %v2757_v36 = vcombine.low %v142_v24, %v146_v25 }
  0x9f   :  { %v274_v27 = vld [vmem:[%s4164_s1 + $0x7f0] sm:$0xff]  ;;  %1762 = vmatpush1.bf16.msra.mxu0 %v2645_v21 }
  0xa0   :  { %1763 = vmatprep.subr.bf16.mxu0 %v2638_v23  ;;  %v2886_v31 = vcombine.high %v270_v26, %v274_v27  ;;  %v134_v32 = vld [vmem:[%s4164_s1 + $0x390] sm:$0xff]  ;;  %v2885_v37 = vcombine.low %v270_v26, %v274_v27 }
  0xa1   :  { %1803 = vmatpush1.bf16.msra.mxu1 %v2773_v22  ;;  %v138_v33 = vld [vmem:[%s4164_s1 + $0x3b0] sm:$0xff] }
  0xa2   :  { %1804 = vmatprep.subr.bf16.mxu1 %v2766_v56  ;;  %v262_v34 = vld [vmem:[%s4164_s1 + $0x790] sm:$0xff]  ;;  %v2750_v38 = vcombine.high %v134_v32, %v138_v33  ;;  %v2749_v44 = vcombine.low %v134_v32, %v138_v33 }
  0xa3   :  { %v266_v35 = vld [vmem:[%s4164_s1 + $0x7b0] sm:$0xff]  ;;  %1764 = vmatpush1.bf16.msra.mxu0 %v2637_v28  ;;  %v79_v28 = vld [vmem:[%s4164_s1 + $0x1d8] sm:$0xff] }
  0xa4   :  { %1765 = vmatprep.subr.bf16.mxu0 %v2758_v30  ;;  %v2878_v39 = vcombine.high %v262_v34, %v266_v35  ;;  %v126_v40 = vld [vmem:[%s4164_s1 + $0x350] sm:$0xff]  ;;  %v2877_v45 = vcombine.low %v262_v34, %v266_v35  ;;  %v207_v30 = vld [vmem:[%s4164_s1 + $0x5d8] sm:$0xff] }
  0xa5   :  { %1805 = vmatpush1.bf16.msra.mxu1 %v2765_v29  ;;  %v130_v41 = vld [vmem:[%s4164_s1 + $0x370] sm:$0xff]  ;;  %v83_v29 = vld [vmem:[%s4164_s1 + $0x1f8] sm:$0xff] }
  0xa6   :  { %1806 = vmatprep.subr.bf16.mxu1 %v2886_v31  ;;  %v254_v42 = vld [vmem:[%s4164_s1 + $0x750] sm:$0xff]  ;;  %v2742_v46 = vcombine.high %v126_v40, %v130_v41  ;;  %v2741_v52 = vcombine.low %v126_v40, %v130_v41  ;;  %v211_v31 = vld [vmem:[%s4164_s1 + $0x5f8] sm:$0xff]  ;;  %v2696_v34 = vcombine.high %v79_v28, %v83_v29  ;;  %v2695_v40 = vcombine.low %v79_v28, %v83_v29 }
  0xa7   :  { %v258_v43 = vld [vmem:[%s4164_s1 + $0x770] sm:$0xff]  ;;  %1766 = vmatpush2.bf16.msra.mxu0 %v2757_v36  ;;  %v2824_v35 = vcombine.high %v207_v30, %v211_v31  ;;  %v71_v36 = vld [vmem:[%s4164_s1 + $0x198] sm:$0xff]  ;;  %v2823_v41 = vcombine.low %v207_v30, %v211_v31 }
  0xa8   :  { %1767 = vmatprep.subr.bf16.mxu0 %v2750_v38  ;;  %v2870_v47 = vcombine.high %v254_v42, %v258_v43  ;;  %v118_v48 = vld [vmem:[%s4164_s1 + $0x310] sm:$0xff]  ;;  %v2869_v53 = vcombine.low %v254_v42, %v258_v43  ;;  %v199_v38 = vld [vmem:[%s4164_s1 + $0x598] sm:$0xff] }
  0xa9   :  { %1807 = vmatpush2.bf16.msra.mxu1 %v2885_v37  ;;  %v122_v49 = vld [vmem:[%s4164_s1 + $0x330] sm:$0xff]  ;;  %v75_v37 = vld [vmem:[%s4164_s1 + $0x1b8] sm:$0xff] }
  0xaa   :  { %1808 = vmatprep.subr.bf16.mxu1 %v2878_v39  ;;  %v246_v50 = vld [vmem:[%s4164_s1 + $0x710] sm:$0xff]  ;;  %v2734_v54 = vcombine.high %v118_v48, %v122_v49  ;;  %v2733_v62 = vcombine.low %v118_v48, %v122_v49  ;;  %v203_v39 = vld [vmem:[%s4164_s1 + $0x5b8] sm:$0xff]  ;;  %v2688_v42 = vcombine.high %v71_v36, %v75_v37  ;;  %v2687_v48 = vcombine.low %v71_v36, %v75_v37 }
  0xab   :  { %v250_v51 = vld [vmem:[%s4164_s1 + $0x730] sm:$0xff]  ;;  %1768 = vmatpush2.bf16.msra.mxu0 %v2749_v44  ;;  %v2816_v43 = vcombine.high %v199_v38, %v203_v39  ;;  %v63_v44 = vld [vmem:[%s4164_s1 + $0x158] sm:$0xff]  ;;  %v2815_v49 = vcombine.low %v199_v38, %v203_v39 }
  0xac   :  { %1769 = vmatprep.subr.bf16.mxu0 %v2742_v46  ;;  %v2862_v55 = vcombine.high %v246_v50, %v250_v51  ;;  %v110_v57 = vld [vmem:[%s4164_s1 + $0x2d0] sm:$0xff]  ;;  %v2861_v63 = vcombine.low %v246_v50, %v250_v51  ;;  %v191_v46 = vld [vmem:[%s4164_s1 + $0x558] sm:$0xff] }
  0xad   :  { %1809 = vmatpush2.bf16.msra.mxu1 %v2877_v45  ;;  %v114_v58 = vld [vmem:[%s4164_s1 + $0x2f0] sm:$0xff]  ;;  %v67_v45 = vld [vmem:[%s4164_s1 + $0x178] sm:$0xff] }
  0xae   :  { %1810 = vmatprep.subr.bf16.mxu1 %v2870_v47  ;;  %v238_v60 = vld [vmem:[%s4164_s1 + $0x6d0] sm:$0xff]  ;;  %v2726_v0 = vcombine.high %v110_v57, %v114_v58  ;;  %v2725_v7 = vcombine.low %v110_v57, %v114_v58  ;;  %v195_v47 = vld [vmem:[%s4164_s1 + $0x578] sm:$0xff]  ;;  %v2680_v50 = vcombine.high %v63_v44, %v67_v45  ;;  %v2679_v57 = vcombine.low %v63_v44, %v67_v45 }
  0xaf   :  { %v242_v61 = vld [vmem:[%s4164_s1 + $0x6f0] sm:$0xff]  ;;  %1770 = vmatpush2.bf16.msra.mxu0 %v2741_v52  ;;  %v2808_v51 = vcombine.high %v191_v46, %v195_v47  ;;  %v55_v52 = vld [vmem:[%s4164_s1 + $0x118] sm:$0xff]  ;;  %v2807_v58 = vcombine.low %v191_v46, %v195_v47 }
  0xb0   :  { %1771 = vmatprep.subr.bf16.mxu0 %v2734_v54  ;;  %v2854_v1 = vcombine.high %v238_v60, %v242_v61  ;;  %v102_v2 = vld [vmem:[%s4164_s1 + $0x290] sm:$0xff]  ;;  %v2853_v8 = vcombine.low %v238_v60, %v242_v61  ;;  %v183_v54 = vld [vmem:[%s4164_s1 + $0x518] sm:$0xff] }
  0xb1   :  { %1811 = vmatpush2.bf16.msra.mxu1 %v2869_v53  ;;  %v106_v4 = vld [vmem:[%s4164_s1 + $0x2b0] sm:$0xff]  ;;  %v59_v53 = vld [vmem:[%s4164_s1 + $0x138] sm:$0xff] }
  0xb2   :  { %1812 = vmatprep.subr.bf16.mxu1 %v2862_v55  ;;  %v230_v5 = vld [vmem:[%s4164_s1 + $0x690] sm:$0xff]  ;;  %v2718_v10 = vcombine.high %v102_v2, %v106_v4  ;;  %v2717_v16 = vcombine.low %v102_v2, %v106_v4  ;;  %v187_v55 = vld [vmem:[%s4164_s1 + $0x538] sm:$0xff]  ;;  %v2672_v60 = vcombine.high %v55_v52, %v59_v53 }
  0xb3   :  { %v234_v6 = vld [vmem:[%s4164_s1 + $0x6b0] sm:$0xff]  ;;  %1772 = vmatpush2.bf16.msra.mxu0 %v2733_v62  ;;  %v2800_v61 = vcombine.high %v183_v54, %v187_v55  ;;  %v51_v62 = vld [vmem:[%s4164_s1 + $0xf8] sm:$0xff] }
  0xb4   :  { %1773 = vmatprep.subr.bf16.mxu0 %v2726_v0  ;;  %v2846_v11 = vcombine.high %v230_v5, %v234_v6  ;;  %v94_v12 = vld [vmem:[%s4164_s1 + $0x250] sm:$0xff]  ;;  %v2845_v18 = vcombine.low %v230_v5, %v234_v6  ;;  %v2671_v0 = vcombine.low %v55_v52, %v59_v53  ;;  %v39_v5 = vld [vmem:[%s4164_s1 + $0x98] sm:$0xff] }
  0xb5   :  { %1813 = vmatpush2.bf16.msra.mxu1 %v2861_v63  ;;  %v98_v13 = vld [vmem:[%s4164_s1 + $0x270] sm:$0xff]  ;;  %v179_v63 = vld [vmem:[%s4164_s1 + $0x4f8] sm:$0xff] }
  0xb6   :  { %1814 = vmatprep.subr.bf16.mxu1 %v2854_v1  ;;  %v222_v14 = vld [vmem:[%s4164_s1 + $0x650] sm:$0xff]  ;;  %v2710_v19 = vcombine.high %v94_v12, %v98_v13  ;;  %v2709_v24 = vcombine.low %v94_v12, %v98_v13  ;;  %v2799_v1 = vcombine.low %v183_v54, %v187_v55  ;;  %v43_v6 = vld [vmem:[%s4164_s1 + $0xb8] sm:$0xff] }
  0xb7   :  { %v226_v15 = vld [vmem:[%s4164_s1 + $0x670] sm:$0xff]  ;;  %1774 = vmatpush2.bf16.msra.mxu0 %v2725_v7  ;;  %v167_v7 = vld [vmem:[%s4164_s1 + $0x498] sm:$0xff]  ;;  %v2656_v12 = vcombine.high %v39_v5, %v43_v6 }
  0xb8   :  { %1775 = vmatprep.subr.bf16.mxu0 %v2718_v10  ;;  %v2838_v20 = vcombine.high %v222_v14, %v226_v15  ;;  %v86_v21 = vld [vmem:[%s4164_s1 + $0x210] sm:$0xff]  ;;  %v2837_v25 = vcombine.low %v222_v14, %v226_v15  ;;  %v31_v14 = vld [vmem:[%s4164_s1 + $0x58] sm:$0xff] }
  0xb9   :  { %1815 = vmatpush2.bf16.msra.mxu1 %v2853_v8  ;;  %v90_v22 = vld [vmem:[%s4164_s1 + $0x230] sm:$0xff]  ;;  %v171_v8 = vld [vmem:[%s4164_s1 + $0x4b8] sm:$0xff] }
  0xba   :  { %1816 = vmatprep.subr.bf16.mxu1 %v2846_v11  ;;  %v214_v23 = vld [vmem:[%s4164_s1 + $0x610] sm:$0xff]  ;;  %v2702_v26 = vcombine.high %v86_v21, %v90_v22  ;;  %v2701_v32 = vcombine.low %v86_v21, %v90_v22  ;;  %v2784_v13 = vcombine.high %v167_v7, %v171_v8  ;;  %v35_v15 = vld [vmem:[%s4164_s1 + $0x78] sm:$0xff] }
  0xbb   :  { %v218_v56 = vld [vmem:[%s4164_s1 + $0x630] sm:$0xff]  ;;  %1776 = vmatpush2.bf16.msra.mxu0 %v2717_v16  ;;  %v159_v16 = vld [vmem:[%s4164_s1 + $0x458] sm:$0xff]  ;;  %v2648_v21 = vcombine.high %v31_v14, %v35_v15 }
  0xbc   :  { %1777 = vmatprep.subr.bf16.mxu0 %v2710_v19  ;;  %v2830_v27 = vcombine.high %v214_v23, %v218_v56  ;;  %v2829_v33 = vcombine.low %v214_v23, %v218_v56  ;;  %v2655_v19 = vcombine.low %v39_v5, %v43_v6  ;;  %v23_v23 = vld [vmem:[%s4164_s1 + $0x18] sm:$0xff] }
  0xbd   :  { %1817 = vmatpush2.bf16.msra.mxu1 %v2845_v18  ;;  %v163_v18 = vld [vmem:[%s4164_s1 + $0x478] sm:$0xff] }
  0xbe   :  { %1818 = vmatprep.subr.bf16.mxu1 %v2838_v20  ;;  %v2783_v20 = vcombine.low %v167_v7, %v171_v8  ;;  %v2776_v22 = vcombine.high %v159_v16, %v163_v18  ;;  %v27_v56 = vld [vmem:[%s4164_s1 + $0x38] sm:$0xff] }
  0xbf   :  { %1778 = vmatpush2.bf16.msra.mxu0 %v2709_v24  ;;  %v151_v24 = vld [vmem:[%s4164_s1 + $0x418] sm:$0xff]  ;;  %v2640_v28 = vcombine.high %v23_v23, %v27_v56 }
  0xc0   :  { %1779 = vmatprep.subr.bf16.mxu0 %v2702_v26  ;;  %v2647_v26 = vcombine.low %v31_v14, %v35_v15  ;;  %v143_v30 = vld [vmem:[%s4164_s1 + $0x3d8] sm:$0xff] }
  0xc1   :  { %1819 = vmatpush2.bf16.msra.mxu1 %v2837_v25  ;;  %v155_v25 = vld [vmem:[%s4164_s1 + $0x438] sm:$0xff] }
  0xc2   :  { %1820 = vmatprep.subr.bf16.mxu1 %v2830_v27  ;;  %v2775_v27 = vcombine.low %v159_v16, %v163_v18  ;;  %v2768_v29 = vcombine.high %v151_v24, %v155_v25  ;;  %v147_v31 = vld [vmem:[%s4164_s1 + $0x3f8] sm:$0xff] }
  0xc3   :  { %1780 = vmatpush2.bf16.msra.mxu0 %v2701_v32  ;;  %v271_v32 = vld [vmem:[%s4164_s1 + $0x7d8] sm:$0xff]  ;;  %v2760_v36 = vcombine.high %v143_v30, %v147_v31 }
  0xc4   :  { %1831 = vmatprep.subr.bf16.mxu0 %v2696_v34  ;;  %v2639_v34 = vcombine.low %v23_v23, %v27_v56  ;;  %v135_v38 = vld [vmem:[%s4164_s1 + $0x398] sm:$0xff] }
  0xc5   :  { %1821 = vmatpush2.bf16.msra.mxu1 %v2829_v33  ;;  %v275_v33 = vld [vmem:[%s4164_s1 + $0x7f8] sm:$0xff] }
  0xc6   :  { %1872 = vmatprep.subr.bf16.mxu1 %v2824_v35  ;;  %1782 = vmatmul.mubr.bf16.vlgmr.msra.gmra.mxu0 %v3381_v17  ;;  %v2767_v35 = vcombine.low %v151_v24, %v155_v25  ;;  %v2888_v37 = vcombine.high %v271_v32, %v275_v33  ;;  %v139_v39 = vld [vmem:[%s4164_s1 + $0x3b8] sm:$0xff] }
  0xc7   :  { %1832 = vmatpush1.bf16.msra.mxu0 %v2695_v40  ;;  %1863 = vmatprep.mubr.bf16.mxu0 %v3263_v3  ;;  %v47_v3 = vld [vmem:[%s4164_s1 + $0xd8] sm:$0xff]  ;;  %v2752_v44 = vcombine.high %v135_v38, %v139_v39 }
  0xc8   :  { %1823 = vmatmul.mubr.bf16.vlgmr.msra.gmra.mxu1 %v3397_v59  ;;  %1833 = vmatprep.subr.bf16.mxu0 %v2688_v42  ;;  %v2664_v2 = vcombine.high %v47_v3, %v51_v62  ;;  %v2663_v10 = vcombine.low %v47_v3, %v51_v62  ;;  %v263_v40 = vld [vmem:[%s4164_s1 + $0x798] sm:$0xff]  ;;  %v2759_v42 = vcombine.low %v143_v30, %v147_v31 }
  0xc9   :  { %1873 = vmatpush1.bf16.msra.mxu1 %v2823_v41  ;;  %1904 = vmatprep.mubr.bf16.mxu1 %v3274_v9  ;;  %v175_v9 = vld [vmem:[%s4164_s1 + $0x4d8] sm:$0xff] }
  0xca   :  { %1874 = vmatprep.subr.bf16.mxu1 %v2816_v43  ;;  %v2792_v4 = vcombine.high %v175_v9, %v179_v63  ;;  %v2791_v11 = vcombine.low %v175_v9, %v179_v63  ;;  %v267_v41 = vld [vmem:[%s4164_s1 + $0x7b8] sm:$0xff]  ;;  %v2887_v43 = vcombine.low %v271_v32, %v275_v33 }
  0xcb   :  { %1834 = vmatpush1.bf16.msra.mxu0 %v2687_v48  ;;  %v2880_v45 = vcombine.high %v263_v40, %v267_v41  ;;  %v127_v46 = vld [vmem:[%s4164_s1 + $0x358] sm:$0xff] }
  0xcc   :  { %1835 = vmatprep.subr.bf16.mxu0 %v2680_v50  ;;  %v131_v47 = vld [vmem:[%s4164_s1 + $0x378] sm:$0xff]  ;;  %v2751_v50 = vcombine.low %v135_v38, %v139_v39  ;;  %v3062_v39 = vld [vmem:[%s4165_s2 + $0xf0] sm:$0xff]  }
  0xcd   :  { %1875 = vmatpush1.bf16.msra.mxu1 %v2815_v49  ;;  %v255_v48 = vld [vmem:[%s4164_s1 + $0x758] sm:$0xff]  ;;  %v2744_v52 = vcombine.high %v127_v46, %v131_v47 }
  0xce   :  { %1876 = vmatprep.subr.bf16.mxu1 %v2808_v51  ;;  %v259_v49 = vld [vmem:[%s4164_s1 + $0x778] sm:$0xff]  ;;  %v2879_v51 = vcombine.low %v263_v40, %v267_v41 }
  0xcf   :  { %1836 = vmatpush1.bf16.msra.mxu0 %v2679_v57  ;;  %v2872_v53 = vcombine.high %v255_v48, %v259_v49  ;;  %v119_v54 = vld [vmem:[%s4164_s1 + $0x318] sm:$0xff] }
  0xd0   :  { %1837 = vmatprep.subr.bf16.mxu0 %v2672_v60  ;;  %v123_v55 = vld [vmem:[%s4164_s1 + $0x338] sm:$0xff]  ;;  %v2743_v60 = vcombine.low %v127_v46, %v131_v47 }
  0xd1   :  { %1877 = vmatpush1.bf16.msra.mxu1 %v2807_v58  ;;  %v247_v57 = vld [vmem:[%s4164_s1 + $0x718] sm:$0xff]  ;;  %v2736_v3 = vcombine.high %v119_v54, %v123_v55 }
  0xd2   :  { %1878 = vmatprep.subr.bf16.mxu1 %v2800_v61  ;;  %v251_v58 = vld [vmem:[%s4164_s1 + $0x738] sm:$0xff]  ;;  %v2871_v61 = vcombine.low %v255_v48, %v259_v49  ;;  %v3049_v49 = vld [vmem:[%s4165_s2 + $0x28] sm:$0xff]  }
  0xd3   :  { %1838 = vmatpush1.bf16.msra.mxu0 %v2671_v0  ;;  %v2864_v62 = vcombine.high %v247_v57, %v251_v58  ;;  %v111_v9 = vld [vmem:[%s4164_s1 + $0x2d8] sm:$0xff] }
  0xd4   :  { %1839 = vmatprep.subr.bf16.mxu0 %v2664_v2  ;;  %v115_v63 = vld [vmem:[%s4164_s1 + $0x2f8] sm:$0xff]  ;;  %v2735_v2 = vcombine.low %v119_v54, %v123_v55  ;;  %v3066_v55 = vld [vmem:[%s4165_s2 + $0xe0] sm:$0xff]  }
  0xd5   :  { %1879 = vmatpush1.bf16.msra.mxu1 %v2799_v1  ;;  %v239_v0 = vld [vmem:[%s4164_s1 + $0x6d8] sm:$0xff]  ;;  %v2728_v5 = vcombine.high %v111_v9, %v115_v63 }
  0xd6   :  { %1880 = vmatprep.subr.bf16.mxu1 %v2792_v4  ;;  %v243_v1 = vld [vmem:[%s4164_s1 + $0x6f8] sm:$0xff]  ;;  %v2863_v4 = vcombine.low %v247_v57, %v251_v58  ;;  %v3051_v58 = vld [vmem:[%s4165_s2 + $0x20] sm:$0xff]  }
  0xd7   :  { %1840 = vmatpush1.bf16.msra.mxu0 %v2663_v10  ;;  %v2856_v6 = vcombine.high %v239_v0, %v243_v1  ;;  %v103_v7 = vld [vmem:[%s4164_s1 + $0x298] sm:$0xff] }
  0xd8   :  { %1841 = vmatprep.subr.bf16.mxu0 %v2656_v12  ;;  %v107_v8 = vld [vmem:[%s4164_s1 + $0x2b8] sm:$0xff]  ;;  %v2727_v12 = vcombine.low %v111_v9, %v115_v63  ;;  %v3054_v63 = vld [vmem:[%s4165_s2 + $0x50] sm:$0xff]  }
  0xd9   :  { %1881 = vmatpush1.bf16.msra.mxu1 %v2791_v11  ;;  %v231_v10 = vld [vmem:[%s4164_s1 + $0x698] sm:$0xff]  ;;  %v2720_v14 = vcombine.high %v103_v7, %v107_v8 }
  0xda   :  { %1882 = vmatprep.subr.bf16.mxu1 %v2784_v13  ;;  %v235_v11 = vld [vmem:[%s4164_s1 + $0x6b8] sm:$0xff]  ;;  %v2855_v13 = vcombine.low %v239_v0, %v243_v1  ;;  %v3070_v1 = vld [vmem:[%s4165_s2 + $0xd0] sm:$0xff]  }
  0xdb   :  { %1842 = vmatpush1.bf16.msra.mxu0 %v2655_v19  ;;  %v2848_v15 = vcombine.high %v231_v10, %v235_v11  ;;  %v95_v16 = vld [vmem:[%s4164_s1 + $0x258] sm:$0xff] }
  0xdc   :  { %1843 = vmatprep.subr.bf16.mxu0 %v2648_v21  ;;  %v99_v18 = vld [vmem:[%s4164_s1 + $0x278] sm:$0xff]  ;;  %v2719_v21 = vcombine.low %v103_v7, %v107_v8  ;;  %v3072_v7 = vld [vmem:[%s4165_s2 + $0xc8] sm:$0xff]  }
  0xdd   :  { %1883 = vmatpush1.bf16.msra.mxu1 %v2783_v20  ;;  %v223_v19 = vld [vmem:[%s4164_s1 + $0x658] sm:$0xff]  ;;  %v2712_v23 = vcombine.high %v95_v16, %v99_v18  ;;  %v3057_v8 = vld [vmem:[%s4165_s2 + $0x8] sm:$0xff]  }
  0xde   :  { %1884 = vmatprep.subr.bf16.mxu1 %v2776_v22  ;;  %v227_v20 = vld [vmem:[%s4164_s1 + $0x678] sm:$0xff]  ;;  %v2847_v22 = vcombine.low %v231_v10, %v235_v11  ;;  %v3058_v11 = vld [vmem:[%s4165_s2 + $0x40] sm:$0xff]  }
  0xdf   :  { %1844 = vmatpush1.bf16.msra.mxu0 %v2647_v26  ;;  %v2840_v56 = vcombine.high %v223_v19, %v227_v20  ;;  %v87_v24 = vld [vmem:[%s4164_s1 + $0x218] sm:$0xff] }
  0xe0   :  { %1845 = vmatprep.subr.bf16.mxu0 %v2640_v28  ;;  %v91_v25 = vld [vmem:[%s4164_s1 + $0x238] sm:$0xff]  ;;  %v2711_v28 = vcombine.low %v95_v16, %v99_v18  ;;  %v3075_v16 = vld [vmem:[%s4165_s2 + $0x80] sm:$0xff]  }
  0xe1   :  { %1885 = vmatpush1.bf16.msra.mxu1 %v2775_v27  ;;  %v215_v26 = vld [vmem:[%s4164_s1 + $0x618] sm:$0xff]  ;;  %v2704_v30 = vcombine.high %v87_v24, %v91_v25  ;;  %v2703_v32 = vcombine.low %v87_v24, %v91_v25  ;;  %v3081_v24 = vld [vmem:[%s4165_s2 + $0x128] sm:$0xff]   ;;  %v3082_v25 = vld [vmem:[%s4165_s2 + $0x160] sm:$0xff]  }
  0xe2   :  { %1886 = vmatprep.subr.bf16.mxu1 %v2768_v29  ;;  %v219_v27 = vld [vmem:[%s4164_s1 + $0x638] sm:$0xff]  ;;  %v2839_v29 = vcombine.low %v223_v19, %v227_v20 }
  0xe3   :  { %1846 = vmatpush1.bf16.msra.mxu0 %v2639_v34  ;;  %v2832_v31 = vcombine.high %v215_v26, %v219_v27  ;;  %v2831_v33 = vcombine.low %v215_v26, %v219_v27  ;;  %v3044_v34 = vld [vmem:[%s4165_s2 + $0x78] sm:$0xff]   ;;  %v3083_v26 = vld [vmem:[%s4165_s2 + $0x120] sm:$0xff]  }
  0xe4   :  { %1847 = vmatprep.subr.bf16.mxu0 %v2760_v36  ;;  %v3045_v36 = vld [vmem:[%s4165_s2 + $0x38] sm:$0xff]  }
  0xe5   :  { %1887 = vmatpush1.bf16.msra.mxu1 %v2767_v35  ;;  %v3060_v35 = vld [vmem:[%s4165_s2 + $0xf8] sm:$0xff]  }
  0xe6   :  { %1888 = vmatprep.subr.bf16.mxu1 %v2888_v37  ;;  %v3046_v37 = vld [vmem:[%s4165_s2 + $0x70] sm:$0xff]   ;;  %v3061_v38 = vld [vmem:[%s4165_s2 + $0xb8] sm:$0xff]  }
  0xe7   :  { %1848 = vmatpush2.bf16.msra.mxu0 %v2759_v42  ;;  %v3047_v42 = vld [vmem:[%s4165_s2 + $0x30] sm:$0xff]   ;;  %v3053_v9 = vld [vmem:[%s4165_s2 + $0x18] sm:$0xff]  }
  0xe8   :  { %1849 = vmatprep.subr.bf16.mxu0 %v2752_v44  ;;  %v3048_v44 = vld [vmem:[%s4165_s2 + $0x68] sm:$0xff]   ;;  %v3069_v0 = vld [vmem:[%s4165_s2 + $0x98] sm:$0xff]  }
  0xe9   :  { %1889 = vmatpush2.bf16.msra.mxu1 %v2887_v43  ;;  %v3076_v18 = vld [vmem:[%s4165_s2 + $0x178] sm:$0xff]  }
  0xea   :  { %1890 = vmatprep.subr.bf16.mxu1 %v2880_v45  ;;  %v3063_v45 = vld [vmem:[%s4165_s2 + $0xb0] sm:$0xff]   ;;  %v3092_v19 = vld [vmem:[%s4165_s2 + $0x1f8] sm:$0xff]  }
  0xeb   :  { %1850 = vmatpush2.bf16.msra.mxu0 %v2751_v50  ;;  %v3077_v20 = vld [vmem:[%s4165_s2 + $0x138] sm:$0xff]  }
  0xec   :  { %1851 = vmatprep.subr.bf16.mxu0 %v2744_v52  ;;  %v3050_v52 = vld [vmem:[%s4165_s2 + $0x60] sm:$0xff]   ;;  %v3084_v27 = vld [vmem:[%s4165_s2 + $0x158] sm:$0xff]  }
  0xed   :  { %1891 = vmatpush2.bf16.msra.mxu1 %v2879_v51 }
  0xee   :  { %1892 = vmatprep.subr.bf16.mxu1 %v2872_v53  ;;  %v3065_v53 = vld [vmem:[%s4165_s2 + $0xa8] sm:$0xff]  }
  0xef   :  { %1852 = vmatpush2.bf16.msra.mxu0 %v2743_v60 }
  0xf0   :  { %1853 = vmatprep.subr.bf16.mxu0 %v2736_v3  ;;  %v3067_v3 = vld [vmem:[%s4165_s2 + $0xa0] sm:$0xff]  }
  0xf1   :  { %1893 = vmatpush2.bf16.msra.mxu1 %v2871_v61  ;;  %v3052_v61 = vld [vmem:[%s4165_s2 + $0x58] sm:$0xff]  }
  0xf2   :  { %1894 = vmatprep.subr.bf16.mxu1 %v2864_v62  ;;  %v3068_v62 = vld [vmem:[%s4165_s2 + $0xd8] sm:$0xff]  }
  0xf3   :  { %1854 = vmatpush2.bf16.msra.mxu0 %v2735_v2  ;;  %v3055_v2 = vld [vmem:[%s4165_s2 + $0x10] sm:$0xff]  }
  0xf4   :  { %1855 = vmatprep.subr.bf16.mxu0 %v2728_v5  ;;  %v3056_v5 = vld [vmem:[%s4165_s2 + $0x48] sm:$0xff]  }
  0xf5   :  { %1895 = vmatpush2.bf16.msra.mxu1 %v2863_v4 }
  0xf6   :  { %1896 = vmatprep.subr.bf16.mxu1 %v2856_v6  ;;  %v3071_v6 = vld [vmem:[%s4165_s2 + $0x90] sm:$0xff]  }
  0xf7   :  { %1856 = vmatpush2.bf16.msra.mxu0 %v2727_v12  ;;  %v3073_v12 = vld [vmem:[%s4165_s2 + $0x88] sm:$0xff]  }
  0xf8   :  { %1857 = vmatprep.subr.bf16.mxu0 %v2720_v14  ;;  %v3059_v14 = vld [vmem:[%s4165_s2] sm:$0xff]  }
  0xf9   :  { %1897 = vmatpush2.bf16.msra.mxu1 %v2855_v13  ;;  %v3074_v13 = vld [vmem:[%s4165_s2 + $0xc0] sm:$0xff]  }
  0xfa   :  { %1898 = vmatprep.subr.bf16.mxu1 %v2848_v15 }
  0xfb   :  { %1858 = vmatpush2.bf16.msra.mxu0 %v2719_v21 }
  0xfc   :  { %1859 = vmatprep.subr.bf16.mxu0 %v2712_v23  ;;  %v3079_v23 = vld [vmem:[%s4165_s2 + $0x130] sm:$0xff]  }
  0xfd   :  { %1899 = vmatpush2.bf16.msra.mxu1 %v2847_v22  ;;  %v3078_v22 = vld [vmem:[%s4165_s2 + $0x170] sm:$0xff]  }
  0xfe   :  { %1900 = vmatprep.subr.bf16.mxu1 %v2840_v56  ;;  %v3080_v56 = vld [vmem:[%s4165_s2 + $0x168] sm:$0xff]  }
  0xff   :  { %1860 = vmatpush2.bf16.msra.mxu0 %v2711_v28  ;;  %v3085_v28 = vld [vmem:[%s4165_s2 + $0x118] sm:$0xff]  }
 0x100   :  { %1861 = vmatprep.subr.bf16.mxu0 %v2704_v30  ;;  %v3087_v30 = vld [vmem:[%s4165_s2 + $0x110] sm:$0xff]  }
 0x101   :  { %1901 = vmatpush2.bf16.msra.mxu1 %v2839_v29  ;;  %v3086_v29 = vld [vmem:[%s4165_s2 + $0x150] sm:$0xff]  }
 0x102   :  { %1902 = vmatprep.subr.bf16.mxu1 %v2832_v31  ;;  %v3088_v31 = vld [vmem:[%s4165_s2 + $0x148] sm:$0xff]  }
 0x103   :  { %1862 = vmatpush2.bf16.msra.mxu0 %v2703_v32  ;;  %v3089_v32 = vld [vmem:[%s4165_s2 + $0x108] sm:$0xff]  }
 0x104   :  { %2954 = vmatprep.subr.bf16.mxu0 %v3044_v34  ;;  %v3091_v34 = vld [vmem:[%s4165_s2 + $0x100] sm:$0xff]  }
 0x105   :  { %1903 = vmatpush2.bf16.msra.mxu1 %v2831_v33  ;;  %v3090_v33 = vld [vmem:[%s4165_s2 + $0x140] sm:$0xff]  }
 0x106   :  { %2976 = vmatprep.subr.bf16.mxu1 %v3060_v35  ;;  %v1619_v40 = vpop.f32.mrf.mxu0  ;;  %1864 = vmatmul.mubr.bf16.vlgmr.msra.gmra.mxu0 %v3381_v17 }
 0x107   :  { %2955 = vmatpush3.bf16.msra.mxu0 %v3045_v36 }
 0x108   :  { %v1660_v41 = vpop.f32.mrf.mxu1  ;;  %1905 = vmatmul.mubr.bf16.vlgmr.msra.gmra.mxu1 %v3397_v59  ;;  %v1621_v43 = vpop.f32.mrf.mxu0  ;;  %2956 = vmatprep.subr.bf16.mxu0 %v3046_v37  ;;  %v3064_v59 = vld [vmem:[%s4165_s2 + $0xe8] sm:$0xff]  }
 0x109   :  { %2977 = vmatpush3.bf16.msra.mxu1 %v3061_v38  ;;  %v1661_v4 = vadd.f32 %v1660_v41, %v1619_v40 }
 0x10a   :  { %v1662_v17 = vpop.f32.mrf.mxu1  ;;  %2978 = vmatprep.subr.bf16.mxu1 %v3062_v39  ;;  %v1623_v47 = vpop.f32.mrf.mxu0 }
 0x10b   :  { %v1663_v46 = vadd.f32 %v1662_v17, %v1621_v43  ;;  %2957 = vmatpush3.bf16.msra.mxu0 %v3047_v42  ;;  %v1913_v10 = vmul.f32 0.2, %v1661_v4 }
 0x10c   :  { %v1664_v48 = vpop.f32.mrf.mxu1  ;;  %v1624_v51 = vpop.f32.mrf.mxu0  ;;  %2958 = vmatprep.subr.bf16.mxu0 %v3048_v44 }
 0x10d   :  { %v1914_v50 = vmul.f32 0.2, %v1663_v46  ;;  %2979 = vmatpush3.bf16.msra.mxu1 %v3063_v45  ;;  %v1921_v15 = vmax.f32 %v1661_v4, %v1913_v10  ;;  %v3093_v48 = vld [vmem:[%s4165_s2 + $0x1b8] sm:$0xff]   ;;  %v3095_v51 = vld [vmem:[%s4165_s2 + $0x1b0] sm:$0xff]  }
 0x10e   :  { %v1665_v54 = vpop.f32.mrf.mxu1  ;;  %2980 = vmatprep.subr.bf16.mxu1 %v3064_v59 }
 0x10f   :  { %v1922_v57 = vmax.f32 %v1663_v46, %v1914_v50  ;;  %2959 = vmatpush3.bf16.msra.mxu0 %v3049_v49  ;;  %v1929_v21 = vpack.c.bf16 %v1921_v15, %v1921_v15  ;;  %v3094_v50 = vld [vmem:[%s4165_s2 + $0x1f0] sm:$0xff]   ;;  %v3098_v54 = vld [vmem:[%s4165_s2 + $0x1e0] sm:$0xff]  }
 0x110   :  { %2960 = vmatprep.subr.bf16.mxu0 %v3050_v52  ;;  %v3096_v52 = vld [vmem:[%s4165_s2 + $0x1e8] sm:$0xff]  }
 0x111   :  { %v1930_v60 = vpack.c.bf16 %v1922_v57, %v1922_v57  ;;  %2981 = vmatpush3.bf16.msra.mxu1 %v3065_v53  ;;  %v3097_v53 = vld [vmem:[%s4165_s2 + $0x1a8] sm:$0xff]   ;;  %v3100_v57 = vld [vmem:[%s4165_s2 + $0x1d8] sm:$0xff]  }
 0x112   :  { %2982 = vmatprep.subr.bf16.mxu1 %v3066_v55  ;;  %v3099_v55 = vld [vmem:[%s4165_s2 + $0x1a0] sm:$0xff]  }
 0x113   :  { %2488 = vmatprep.mubr.bf16.mxu0 %v1930_v60  ;;  %2961 = vmatpush3.bf16.msra.mxu0 %v3051_v58  ;;  %v3101_v58 = vld [vmem:[%s4165_s2 + $0x198] sm:$0xff]   ;;  %v3102_v60 = vld [vmem:[%s4165_s2 + $0x1d0] sm:$0xff]  }
 0x114   :  { %2962 = vmatprep.subr.bf16.mxu0 %v3052_v61  ;;  %v3103_v61 = vld [vmem:[%s4165_s2 + $0x190] sm:$0xff]  }
 0x115   :  { %2983 = vmatpush3.bf16.msra.mxu1 %v3067_v3  ;;  %v3104_v3 = vld [vmem:[%s4165_s2 + $0x1c8] sm:$0xff]  }
 0x116   :  { %2984 = vmatprep.subr.bf16.mxu1 %v3068_v62  ;;  %v3105_v62 = vld [vmem:[%s4165_s2 + $0x188] sm:$0xff]  }
 0x117   :  { %2963 = vmatpush3.bf16.msra.mxu0 %v3053_v9  ;;  %v3106_v9 = vld [vmem:[%s4165_s2 + $0x1c0] sm:$0xff]  }
 0x118   :  { %2964 = vmatprep.subr.bf16.mxu0 %v3054_v63  ;;  %v3107_v63 = vld [vmem:[%s4165_s2 + $0x180] sm:$0xff]  }
 0x119   :  { %2985 = vmatpush3.bf16.msra.mxu1 %v3069_v0 }
 0x11a   :  { %2986 = vmatprep.subr.bf16.mxu1 %v3070_v1 }
 0x11b   :  { %2965 = vmatpush3.bf16.msra.mxu0 %v3055_v2 }
 0x11c   :  { %2966 = vmatprep.subr.bf16.mxu0 %v3056_v5 }
 0x11d   :  { %2987 = vmatpush3.bf16.msra.mxu1 %v3071_v6 }
 0x11e   :  { %2988 = vmatprep.subr.bf16.mxu1 %v3072_v7 }
 0x11f   :  { %2967 = vmatpush3.bf16.msra.mxu0 %v3057_v8 }
 0x120   :  { %2968 = vmatprep.subr.bf16.mxu0 %v3058_v11 }
 0x121   :  { %2989 = vmatpush3.bf16.msra.mxu1 %v3073_v12 }
 0x122   :  { %2990 = vmatprep.subr.bf16.mxu1 %v3074_v13 }
 0x123   :  { %2969 = vmatpush3.bf16.msra.mxu0 %v3059_v14 }
 0x124   :  { %2998 = vmatprep.subr.bf16.mxu0 %v3076_v18 }
 0x125   :  { %2991 = vmatpush3.bf16.msra.mxu1 %v3075_v16 }
 0x126   :  { %3020 = vmatprep.subr.bf16.mxu1 %v3092_v19  ;;  %2489 = vmatmul.mubr.bf16.vlgmr.msra.gmra.mxu0 %v1929_v21 }
 0x127   :  { %2999 = vmatpush3.bf16.msra.mxu0 %v3077_v20 }
 0x128   :  { %3000 = vmatprep.subr.bf16.mxu0 %v3078_v22 }
 0x12b   :  { %3001 = vmatpush3.bf16.msra.mxu0 %v3079_v23 }
 0x12c   :  { %3002 = vmatprep.subr.bf16.mxu0 %v3080_v56 }
 0x12f   :  { %3003 = vmatpush3.bf16.msra.mxu0 %v3081_v24 }
 0x130   :  { %3004 = vmatprep.subr.bf16.mxu0 %v3082_v25 }
 0x133   :  { %3005 = vmatpush3.bf16.msra.mxu0 %v3083_v26 }
 0x134   :  { %3006 = vmatprep.subr.bf16.mxu0 %v3084_v27 }
 0x137   :  { %3007 = vmatpush3.bf16.msra.mxu0 %v3085_v28 }
 0x138   :  { %3008 = vmatprep.subr.bf16.mxu0 %v3086_v29 }
 0x13b   :  { %3009 = vmatpush3.bf16.msra.mxu0 %v3087_v30 }
 0x13c   :  { %3010 = vmatprep.subr.bf16.mxu0 %v3088_v31 }
 0x13f   :  { %3011 = vmatpush3.bf16.msra.mxu0 %v3089_v32 }
 0x140   :  { %3012 = vmatprep.subr.bf16.mxu0 %v3090_v33 }
 0x143   :  { %3013 = vmatpush3.bf16.msra.mxu0 %v3091_v34 }
 0x146   :  { %v1701_v35 = vpop.f32.mrf.mxu0 }
 0x148   :  { %v1742_v36 = vpop.f32.mrf.mxu1  ;;  %v1703_v38 = vpop.f32.mrf.mxu0 }
 0x149   :  { %v1743_v37 = vadd.f32 %v1742_v36, %v1701_v35 }
 0x14a   :  { %v1744_v39 = vpop.f32.mrf.mxu1  ;;  %v1705_v42 = vpop.f32.mrf.mxu0 }
 0x14b   :  { %v1915_v40 = vmul.f32 0.2, %v1743_v37  ;;  %v1745_v41 = vadd.f32 %v1744_v39, %v1703_v38  ;;  %v2889_v39 = vld [vmem:[%s4166_s3] ss:$0 sm:$0xff]  ;;  %s3108_s3 = scalar_lea.vmem %s2625_s8, 32 }
 0x14c   :  { %v1746_v43 = vpop.f32.mrf.mxu1  ;;  %v1706_v45 = vpop.f32.mrf.mxu0  ;;  %p3109_p0 = scmp.ne.s32.totalorder %s2625_s8, %s3108_s3  ;;  %p3114_p2 = scmp.lt.s32.totalorder %s3108_s3, %s3108_s3 }
 0x14d   :  { %v1916_v44 = vmul.f32 0.2, %v1745_v41  ;;  %v1923_v17 = vmax.f32 %v1743_v37, %v1915_v40 }
 0x14e   :  { %v1747_v59 = vpop.f32.mrf.mxu1  ;;  %p3115_p3 = por %p3114_p2, %p3113_p1 }
 0x14f   :  { %v1924_v46 = vmax.f32 %v1745_v41, %v1916_v44  ;;  %v1931_v49 = vpack.c.bf16 %v1923_v17, %v1923_v17 }
 0x150   :  { %p3116_p4 = pnand %p3115_p3, %p3109_p0 }
 0x151   :  { %v1932_v47 = vpack.c.bf16 %v1924_v46, %v1924_v46 }
 0x153   :  { %2528 = vmatprep.mubr.bf16.mxu1 %v1932_v47 }
 0x154   :  { %2529 = vmatmul.mubr.bf16.vlgmr.msra.gmra.mxu1 %v1931_v49 }
 0x155   :  { %3021 = vmatpush3.bf16.msra.mxu1 %v3093_v48 }
 0x156   :  { %3022 = vmatprep.subr.bf16.mxu1 %v3094_v50 }
 0x159   :  { %3023 = vmatpush3.bf16.msra.mxu1 %v3095_v51 }
 0x15a   :  { %3024 = vmatprep.subr.bf16.mxu1 %v3096_v52 }
 0x15d   :  { %3025 = vmatpush3.bf16.msra.mxu1 %v3097_v53 }
 0x15e   :  { %3026 = vmatprep.subr.bf16.mxu1 %v3098_v54 }
 0x161   :  { %3027 = vmatpush3.bf16.msra.mxu1 %v3099_v55 }
 0x162   :  { %3028 = vmatprep.subr.bf16.mxu1 %v3100_v57 }
 0x165   :  { %3029 = vmatpush3.bf16.msra.mxu1 %v3101_v58 }
 0x166   :  { %3030 = vmatprep.subr.bf16.mxu1 %v3102_v60 }
 0x169   :  { %3031 = vmatpush3.bf16.msra.mxu1 %v3103_v61 }
 0x16a   :  { %3032 = vmatprep.subr.bf16.mxu1 %v3104_v3 }
 0x16d   :  { %3033 = vmatpush3.bf16.msra.mxu1 %v3105_v62 }
 0x16e   :  { %3034 = vmatprep.subr.bf16.mxu1 %v3106_v9 }
 0x171   :  { %3035 = vmatpush3.bf16.msra.mxu1 %v3107_v63 }
 0x186   :  { %v1783_v0 = vpop.f32.mrf.mxu0 }
 0x188   :  { %v1824_v1 = vpop.f32.mrf.mxu1  ;;  %v1785_v4 = vpop.f32.mrf.mxu0 }
 0x189   :  { %v1825_v2 = vadd.f32 %v1824_v1, %v1783_v0 }
 0x18a   :  { %v1826_v5 = vpop.f32.mrf.mxu1  ;;  %v1787_v8 = vpop.f32.mrf.mxu0 }
 0x18b   :  { %v1917_v6 = vmul.f32 0.2, %v1825_v2  ;;  %v1827_v7 = vadd.f32 %v1826_v5, %v1785_v4 }
 0x18c   :  { %v1828_v10 = vpop.f32.mrf.mxu1  ;;  %v1788_v12 = vpop.f32.mrf.mxu0 }
 0x18d   :  { %v1918_v11 = vmul.f32 0.2, %v1827_v7  ;;  %v1925_v13 = vmax.f32 %v1825_v2, %v1917_v6 }
 0x18e   :  { %v1829_v14 = vpop.f32.mrf.mxu1 }
 0x18f   :  { %v1926_v15 = vmax.f32 %v1827_v7, %v1918_v11  ;;  %v1933_v18 = vpack.c.bf16 %v1925_v13, %v1925_v13 }
 0x191   :  { %v1934_v16 = vpack.c.bf16 %v1926_v15, %v1926_v15 }
 0x193   :  { %2568 = vmatprep.mubr.bf16.mxu0 %v1934_v16 }
 0x194   :  { %2569 = vmatmul.mubr.bf16.vlgmr.msra.gmra.mxu0 %v1933_v18 }
 0x1c6   :  { %v1865_v19 = vpop.f32.mrf.mxu0 }
 0x1c8   :  { %v1906_v20 = vpop.f32.mrf.mxu1  ;;  %v1867_v22 = vpop.f32.mrf.mxu0 }
 0x1c9   :  { %v1907_v21 = vadd.f32 %v1906_v20, %v1865_v19 }
 0x1ca   :  { %v1908_v23 = vpop.f32.mrf.mxu1  ;;  %v1869_v25 = vpop.f32.mrf.mxu0 }
 0x1cb   :  { %v1919_v56 = vmul.f32 0.2, %v1907_v21  ;;  %v1909_v24 = vadd.f32 %v1908_v23, %v1867_v22 }
 0x1cc   :  { %v1910_v26 = vpop.f32.mrf.mxu1  ;;  %v1870_v28 = vpop.f32.mrf.mxu0 }
 0x1cd   :  { %v1920_v27 = vmul.f32 0.2, %v1909_v24  ;;  %v1927_v29 = vmax.f32 %v1907_v21, %v1919_v56 }
 0x1ce   :  { %v1911_v30 = vpop.f32.mrf.mxu1 }
 0x1cf   :  { %v1928_v31 = vmax.f32 %v1909_v24, %v1920_v27  ;;  %v1935_v33 = vpack.c.bf16 %v1927_v29, %v1927_v29 }
 0x1d1   :  { %v1936_v32 = vpack.c.bf16 %v1928_v31, %v1928_v31 }
 0x1d3   :  { %2608 = vmatprep.mubr.bf16.mxu1 %v1936_v32 }
 0x1d4   :  { %2609 = vmatmul.mubr.bf16.vlgmr.msra.gmra.mxu1 %v1935_v33 }
 0x1e6   :  { %v2970_v34 = vpop.f32.mrf.mxu0 }
 0x1e8   :  { %v2971_v35 = vpop.f32.mrf.mxu0 }
 0x1e9   :  { %v2972_v36 = vadd.f32 %v2971_v35, %v2970_v34 }
 0x1ea   :  { %v2973_v37 = vpop.f32.mrf.mxu0 }
 0x1eb   :  { %v2491_v42 = vadd.f32 %v2972_v36, %v2889_v39 }
 0x1ec   :  { %v2974_v38 = vpop.f32.mrf.mxu0 }
 0x214   :  { %v2992_v40 = vpop.f32.mrf.mxu1 }
 0x216   :  { %v2993_v41 = vpop.f32.mrf.mxu1 }
 0x217   :  { %v2994_v43 = vadd.f32 %v2993_v41, %v2992_v40 }
 0x218   :  { %v2995_v44 = vpop.f32.mrf.mxu1 }
 0x219   :  { %v2531_v45 = vadd.f32 %v2994_v43, %v2491_v42 }
 0x21a   :  { %v2996_v17 = vpop.f32.mrf.mxu1 }
 0x254   :  { %v3014_v59 = vpop.f32.mrf.mxu0 }
 0x256   :  { %v3015_v46 = vpop.f32.mrf.mxu0 }
 0x257   :  { %v3016_v47 = vadd.f32 %v3015_v46, %v3014_v59 }
 0x258   :  { %v3017_v48 = vpop.f32.mrf.mxu0 }
 0x259   :  { %v2571_v49 = vadd.f32 %v3016_v47, %v2531_v45 }
 0x25a   :  { %v3018_v50 = vpop.f32.mrf.mxu0 }
 0x294   :  { %v3036_v51 = vpop.f32.mrf.mxu1 }
 0x296   :  { %v3037_v52 = vpop.f32.mrf.mxu1 }
 0x297   :  { %v3038_v53 = vadd.f32 %v3037_v52, %v3036_v51 }
 0x298   :  { %v3039_v54 = vpop.f32.mrf.mxu1 }
 0x299   :  { %v2611_v55 = vadd.f32 %v3038_v53, %v2571_v49 }
 0x29a   :  { %v3040_v57 = vpop.f32.mrf.mxu1 }
 0x29b   :  { %2617 = vst.msk [vmem:[#allocation2] sm:$0x3] %vm2616_vm0, %v2611_v55 }
 0x29c   :  { %3119 = shalt.err (!%p3116_p4)
}
 0x29d   :  { %2627 = dma.vmem_to_hbm [thread:$0]  %s2625_s8, 32, %s4167_s4, [#allocation3]  }
 0x29e   :  { %3128 = dma.done.wait [#allocation3], 32  }
 0x29f   :  { %3129 = vsyncadd [#allocation3], 4294967264 }
 0x2a0   :  { %2631 = vsyncpa [#allocation3], 1 }

</bundles_post_ra>
